<compile_context>
chip_gen: v6e
topology: v6e:2x2x1
jax: 0.10.0
libtpu: 0.0.40
codegen_flags: <defaults>
</compile_context>

<pallas_src>
import functools

import numpy as np
import jax
import jax.numpy as jnp
from jax import lax
from jax.experimental import pallas as pl
from jax.experimental.pallas import tpu as pltpu

LANE = 128


# ----------------------------------------------------------------------------
# Fused whole-model kernel (single invocation, everything VMEM-resident)
# ----------------------------------------------------------------------------

def _fused_model_kernel(
    idx_ref,                    # (N, 1)            int32   (N = B*T)
    tok_ref,                    # (Vp, C)           f32     (vocab rows padded to 128)
    pos_ref,                    # (T, C)            f32
    mask_ref,                   # (H*N, H*N)        f32     additive 0 / -1e30 bias
    ln1_g_ref, ln1_b_ref,       # (L, 1, C)         f32
    wqkv_ref,                   # (L*H, C, 3*hs)    bf16    (Q pre-scaled by C**-0.5)
    wo_ref,                     # (L*H, hs, C)      bf16
    bo_ref,                     # (L, 1, C)         f32
    ln2_g_ref, ln2_b_ref,       # (L, 1, C)         f32
    w1_ref, b1_ref,             # (L, C, 4C) bf16,  (L, 1, 4C) f32
    w2_ref, b2_ref,             # (L, 4C, C) bf16,  (L, 1, C)  f32
    lnf_g_ref, lnf_b_ref,       # (1, C)            f32
    lmw_ref, lmb_ref,           # (C, Vp) bf16,     (1, Vp)    f32
    out_ref,                    # (N, Vp)           f32
    *, n_layer, n_head, eps,
):
    bf16 = jnp.bfloat16
    N = idx_ref.shape[0]
    T = pos_ref.shape[0]
    B = N // T
    Vp, C = tok_ref.shape
    H = n_head
    hs = C // H

    def ln(v, g, b):
        # LayerNorm stats kept in f32 (v5e VPU/EUP have no bf16 path)
        mu = jnp.mean(v, axis=-1, keepdims=True)
        var = jnp.mean(jnp.square(v - mu), axis=-1, keepdims=True)
        return (v - mu) * lax.rsqrt(var + eps) * g + b

    # ---- fused embedding: exact one-hot gather (f32 MXU) + positional add ----
    ids = idx_ref[...]                                              # (N, 1) int32
    lanes = lax.broadcasted_iota(jnp.int32, (N, Vp), 1)
    onehot = (ids == lanes).astype(jnp.float32)                     # (N, Vp)
    x = jnp.dot(onehot, tok_ref[...], preferred_element_type=jnp.float32)  # (N, C)
    pos = pos_ref[...]
    if B > 1:
        pos = jnp.concatenate([pos] * B, axis=0)                    # (N, C)
    x = x + pos

    mask = mask_ref[...]                                            # (H*N, H*N)

    for l in range(n_layer):                                        # static unroll
        # -------- attention: x = x + Wo(attn(LN1(x))) --------
        xn = ln(x, ln1_g_ref[l], ln1_b_ref[l]).astype(bf16)         # (N, C)
        xb = jnp.broadcast_to(xn[None], (H, N, C))                  # (H, N, C)
        # One batched matmul produces head-major q|k|v (scale already in Wq).
        qkv = jnp.einsum('hnc,hcd->hnd', xb, wqkv_ref[l * H:(l + 1) * H],
                         preferred_element_type=jnp.float32).astype(bf16)  # (H,N,3hs)
        # Leading-dim merges only (layout no-ops): (H, N, hs) -> (H*N, hs).
        q = qkv[:, :, 0:hs].reshape(H * N, hs)
        k = qkv[:, :, hs:2 * hs].reshape(H * N, hs)
        v = qkv[:, :, 2 * hs:3 * hs].reshape(H * N, hs)

        # Single folded score matmul (contract on hs, no materialized transpose),
        # masked by the precomputed block-diagonal + causal additive bias.
        s = lax.dot_general(q, k, (((1,), (1,)), ((), ())),
                            preferred_element_type=jnp.float32) + mask     # (HN,HN)
        s = s - jnp.max(s, axis=-1, keepdims=True)
        p = jnp.exp(s)                                               # f32 softmax
        p = p * pl.reciprocal(jnp.sum(p, axis=-1, keepdims=True), approx=True)

        pv = jnp.dot(p.astype(bf16), v, preferred_element_type=jnp.float32)  # (HN,hs)
        y = pv.reshape(H, N, hs).astype(bf16)
        # Output projection as batched einsum + head-sum (no lane concat).
        proj = jnp.einsum('hnd,hdc->hnc', y, wo_ref[l * H:(l + 1) * H],
                          preferred_element_type=jnp.float32)               # (H,N,C)
        x = x + jnp.sum(proj, axis=0) + bo_ref[l]

        # -------- feed-forward: x = x + W2(relu(W1(LN2(x)))) --------
        xn2 = ln(x, ln2_g_ref[l], ln2_b_ref[l]).astype(bf16)
        h1 = jnp.maximum(
            jnp.dot(xn2, w1_ref[l], preferred_element_type=jnp.float32) + b1_ref[l],
            0.0)
        x = x + jnp.dot(h1.astype(bf16), w2_ref[l],
                        preferred_element_type=jnp.float32) + b2_ref[l]

    # -------- final LN + lm_head (lane-dense 128-wide output) --------
    xf = ln(x, lnf_g_ref[...], lnf_b_ref[...]).astype(bf16)
    out_ref[...] = jnp.dot(xf, lmw_ref[...],
                           preferred_element_type=jnp.float32) + lmb_ref[...]


# ----------------------------------------------------------------------------
# Precomputed block-diagonal (per batch & head) causal additive bias
# ----------------------------------------------------------------------------

@functools.lru_cache(maxsize=8)
def _attn_mask_bias(B, T, H):
    N = B * T
    n = np.arange(N)
    same_b = (n[:, None] // T) == (n[None, :] // T)
    causal = (n[:, None] % T) >= (n[None, :] % T)
    blk = same_b & causal                                   # (N, N)
    ok = np.zeros((H * N, H * N), dtype=bool)
    for h in range(H):
        ok[h * N:(h + 1) * N, h * N:(h + 1) * N] = blk
    return jnp.asarray(np.where(ok, 0.0, -1e30).astype(np.float32))


# ----------------------------------------------------------------------------
# Parameters: deterministic init (PyTorch (out,in) convention) + prep/transpose
# ----------------------------------------------------------------------------

def init_params(key, vocab_size, n_embd, block_size, n_head, n_layer):
    keys = iter(jax.random.split(key, 8 + 16 * n_layer))

    def w(shape):
        return jax.random.normal(next(keys), shape, jnp.float32) * 0.02

    params = {
        "tok_emb": w((vocab_size, n_embd)),
        "pos_emb": w((block_size, n_embd)),
        "lnf_g": jnp.ones((n_embd,), jnp.float32),
        "lnf_b": jnp.zeros((n_embd,), jnp.float32),
        "lm_w": w((vocab_size, n_embd)),
        "lm_b": jnp.zeros((vocab_size,), jnp.float32),
        "layers": [],
    }
    for _ in range(n_layer):
        params["layers"].append({
            # per-head K/Q/V weights stacked along output rows -> (n_embd, n_embd);
            # row block h*hs:(h+1)*hs is head h, matching torch.cat([...], dim=-1)
            "wk": w((n_embd, n_embd)),
            "wq": w((n_embd, n_embd)),
            "wv": w((n_embd, n_embd)),
            "wo": w((n_embd, n_embd)),
            "bo": jnp.zeros((n_embd,), jnp.float32),
            "w1": w((4 * n_embd, n_embd)),
            "b1": jnp.zeros((4 * n_embd,), jnp.float32),
            "w2": w((n_embd, 4 * n_embd)),
            "b2": jnp.zeros((n_embd,), jnp.float32),
            "ln1_g": jnp.ones((n_embd,), jnp.float32),
            "ln1_b": jnp.zeros((n_embd,), jnp.float32),
            "ln2_g": jnp.ones((n_embd,), jnp.float32),
            "ln2_b": jnp.zeros((n_embd,), jnp.float32),
        })
    return params


def prepare_params(params, n_head):
    """One-time conversion: transpose to (in,out), stack per-head QKV/Wo weights,
    fold the attention scale into Q, cast matmul weights to bf16, pad vocab dims
    to a 128-lane boundary."""
    C = params["tok_emb"].shape[1]
    vocab = params["lm_w"].shape[0]
    vocab_pad = pl.cdiv(vocab, LANE) * LANE
    L = len(params["layers"])
    hs = C // n_head
    scale = float(C) ** -0.5   # reference scales scores by n_embd (C) ** -0.5
    bf16 = jnp.bfloat16

    def stack(name):
        return jnp.stack([layer[name] for layer in params["layers"]], axis=0)

    def heads_from_cols(w_t):  # (L, C, H*hs) -> (L, H, C, hs)
        return w_t.reshape(L, C, n_head, hs).transpose(0, 2, 1, 3)

    wq_t = jnp.swapaxes(stack("wq"), 1, 2) * scale        # scale folded into Q
    wk_t = jnp.swapaxes(stack("wk"), 1, 2)
    wv_t = jnp.swapaxes(stack("wv"), 1, 2)
    wqkv_h = jnp.concatenate(
        [heads_from_cols(wq_t), heads_from_cols(wk_t), heads_from_cols(wv_t)],
        axis=3).reshape(L * n_head, C, 3 * hs).astype(bf16)

    wo_t = jnp.swapaxes(stack("wo"), 1, 2)                # (L, C_in, C_out)
    wo_h = wo_t.reshape(L * n_head, hs, C).astype(bf16)   # rows h*hs.. = head h

    return {
        "tok_emb_pad": jnp.pad(params["tok_emb"],
                               ((0, vocab_pad - vocab), (0, 0))),   # (Vp, C) f32
        "pos_emb": params["pos_emb"],
        "ln1_g": stack("ln1_g")[:, None, :], "ln1_b": stack("ln1_b")[:, None, :],
        "wqkv_h": wqkv_h, "wo_h": wo_h, "bo": stack("bo")[:, None, :],
        "ln2_g": stack("ln2_g")[:, None, :], "ln2_b": stack("ln2_b")[:, None, :],
        "w1": jnp.swapaxes(stack("w1"), 1, 2).astype(bf16),
        "b1": stack("b1")[:, None, :],
        "w2": jnp.swapaxes(stack("w2"), 1, 2).astype(bf16),
        "b2": stack("b2")[:, None, :],
        "lnf_g": params["lnf_g"][None, :], "lnf_b": params["lnf_b"][None, :],
        "lm_w": jnp.pad(params["lm_w"].T,
                        ((0, 0), (0, vocab_pad - vocab))).astype(bf16),
        "lm_b": jnp.pad(params["lm_b"], (0, vocab_pad - vocab))[None, :],
        "vocab_size": vocab,
        "n_layer": L,
        "n_head": n_head,
    }


# ----------------------------------------------------------------------------
# Forward pass: everything (embedding gather -> logits) in ONE pallas_call
# ----------------------------------------------------------------------------

def bigram_lm_forward(prep, idx):
    B, T = idx.shape
    vocab = prep["vocab_size"]
    Vp = prep["lm_w"].shape[1]
    N = B * T

    idx2 = idx.reshape(N, 1).astype(jnp.int32)      # (b,t)-row-major token ids
    pos = prep["pos_emb"][:T]                       # (T, C)
    mask = _attn_mask_bias(B, T, prep["n_head"])    # (H*N, H*N) constant bias

    kern = functools.partial(_fused_model_kernel,
                             n_layer=prep["n_layer"],
                             n_head=prep["n_head"],
                             eps=1e-5)

    # No grid: the whole (tiny) model runs in one kernel invocation with all
    # operands VMEM-resident -> zero per-step pipeline overhead and constant
    # weights are DMA'd exactly once (no double-buffering to single-buffer).
    # TODO(synk): at real sizes, add a (B*T) row-tile grid axis, tile the
    # lm_head vocab dimension, and single-buffer constant-weight BlockSpecs so
    # the same fused design still fits v7x's 64 MiB VMEM.
    out = pl.pallas_call(
        kern,
        out_shape=jax.ShapeDtypeStruct((N, Vp), jnp.float32),
        compiler_params=pltpu.CompilerParams(vmem_limit_bytes=32 * 1024 * 1024),
    )(idx2, prep["tok_emb_pad"], pos, mask,
      prep["ln1_g"], prep["ln1_b"], prep["wqkv_h"], prep["wo_h"], prep["bo"],
      prep["ln2_g"], prep["ln2_b"], prep["w1"], prep["b1"], prep["w2"], prep["b2"],
      prep["lnf_g"], prep["lnf_b"], prep["lm_w"], prep["lm_b"])

    logits = out.reshape(B, T, Vp)[:, :, :vocab]    # drop lane-padding columns
    # TODO(synk): cross-entropy loss path (targets is not None) not implemented;
    # the reference returns loss=None when targets is None (this path).
    return logits, None


# ----------------------------------------------------------------------------
# Main
# ----------------------------------------------------------------------------

if __name__ == "__main__":
    vocab_size = 65
    n_embd = 32
    block_size = 8
    n_head = 4
    n_layer = 2
    B, T = 2, 8

    key = jax.random.PRNGKey(0)
    pkey, ikey = jax.random.split(key)
    params = init_params(pkey, vocab_size, n_embd, block_size, n_head, n_layer)
    prep = prepare_params(params, n_head)
    idx = jax.random.randint(ikey, (B, T), 0, vocab_size, dtype=jnp.int32)

    logits, loss = bigram_lm_forward(prep, idx)
    logits = jax.block_until_ready(logits)

    assert logits.shape == (B, T, vocab_size)
    assert logits.dtype == jnp.float32
    assert loss is None
    assert bool(jnp.all(jnp.isfinite(logits)))
    print("KERNEL_OK")
</pallas_src>

<mosaic_0001>
module attributes {stable_mosaic.version = 11 : i64} {
  func.func @_fused_model_kernel(%arg0: memref<16x1xi32, #tpu.memory_space<vmem>>, %arg1: memref<128x32xf32, #tpu.memory_space<vmem>>, %arg2: memref<8x32xf32, #tpu.memory_space<vmem>>, %arg3: memref<64x64xf32, #tpu.memory_space<vmem>>, %arg4: memref<2x1x32xf32, #tpu.memory_space<vmem>>, %arg5: memref<2x1x32xf32, #tpu.memory_space<vmem>>, %arg6: memref<8x32x24xbf16, #tpu.memory_space<vmem>>, %arg7: memref<8x8x32xbf16, #tpu.memory_space<vmem>>, %arg8: memref<2x1x32xf32, #tpu.memory_space<vmem>>, %arg9: memref<2x1x32xf32, #tpu.memory_space<vmem>>, %arg10: memref<2x1x32xf32, #tpu.memory_space<vmem>>, %arg11: memref<2x32x128xbf16, #tpu.memory_space<vmem>>, %arg12: memref<2x1x128xf32, #tpu.memory_space<vmem>>, %arg13: memref<2x128x32xbf16, #tpu.memory_space<vmem>>, %arg14: memref<2x1x32xf32, #tpu.memory_space<vmem>>, %arg15: memref<1x32xf32, #tpu.memory_space<vmem>>, %arg16: memref<1x32xf32, #tpu.memory_space<vmem>>, %arg17: memref<32x128xbf16, #tpu.memory_space<vmem>>, %arg18: memref<1x128xf32, #tpu.memory_space<vmem>>, %arg19: memref<16x128xf32, #tpu.memory_space<vmem>>) attributes {dimension_semantics = [], scalar_prefetch = 0 : i64, scratch_operands = 0 : i64, tpu.core_type = #tpu.core_type<tc>} {
    %c0 = arith.constant 0 : index
    %c0_0 = arith.constant 0 : index
    %0 = vector.load %arg0[%c0, %c0_0] : memref<16x1xi32, #tpu.memory_space<vmem>>, vector<16x1xi32>
    %1 = tpu.iota {dimensions = array<i32: 1>} : vector<16x128xi32>
    %2 = vector.broadcast %0 : vector<16x1xi32> to vector<16x128xi32>
    %3 = arith.cmpi eq, %2, %1 : vector<16x128xi32>
    %4 = arith.extui %3 : vector<16x128xi1> to vector<16x128xi32>
    %5 = arith.sitofp %4 : vector<16x128xi32> to vector<16x128xf32>
    %c0_1 = arith.constant 0 : index
    %c0_2 = arith.constant 0 : index
    %6 = vector.load %arg1[%c0_1, %c0_2] : memref<128x32xf32, #tpu.memory_space<vmem>>, vector<128x32xf32>
    %cst = arith.constant dense<0.000000e+00> : vector<16x32xf32>
    %7 = tpu.matmul %5, %6, %cst {dimension_numbers = #tpu.dot_dimension_numbers<[1], [0], [0], [1], [0, 0, 1, 1], [], []>} : vector<16x128xf32>, vector<128x32xf32>, vector<16x32xf32> -> vector<16x32xf32>
    %c0_3 = arith.constant 0 : index
    %c0_4 = arith.constant 0 : index
    %8 = vector.load %arg2[%c0_3, %c0_4] : memref<8x32xf32, #tpu.memory_space<vmem>>, vector<8x32xf32>
    %9 = tpu.concatenate %8, %8 in 0 : vector<8x32xf32>, vector<8x32xf32> -> vector<16x32xf32>
    %10 = arith.addf %7, %9 : vector<16x32xf32>
    %c0_5 = arith.constant 0 : index
    %c0_6 = arith.constant 0 : index
    %11 = vector.load %arg3[%c0_5, %c0_6] : memref<64x64xf32, #tpu.memory_space<vmem>>, vector<64x64xf32>
    %c0_7 = arith.constant 0 : index
    %c0_8 = arith.constant 0 : index
    %c0_9 = arith.constant 0 : index
    %12 = vector.load %arg4[%c0_7, %c0_8, %c0_9] : memref<2x1x32xf32, #tpu.memory_space<vmem>>, vector<1x1x32xf32>
    %13 = vector.shape_cast %12 : vector<1x1x32xf32> to vector<1x32xf32>
    %c0_10 = arith.constant 0 : index
    %c0_11 = arith.constant 0 : index
    %c0_12 = arith.constant 0 : index
    %14 = vector.load %arg5[%c0_10, %c0_11, %c0_12] : memref<2x1x32xf32, #tpu.memory_space<vmem>>, vector<1x1x32xf32>
    %15 = vector.shape_cast %14 : vector<1x1x32xf32> to vector<1x32xf32>
    %cst_13 = arith.constant dense<0.000000e+00> : vector<16xf32>
    %16 = vector.multi_reduction <add>, %10, %cst_13 [1] : vector<16x32xf32> to vector<16xf32>
    %17 = vector.shape_cast %16 : vector<16xf32> to vector<16x1xf32>
    %cst_14 = arith.constant 3.200000e+01 : f32
    %18 = vector.broadcast %cst_14 : f32 to vector<16x1xf32>
    %19 = arith.divf %17, %18 : vector<16x1xf32>
    %20 = vector.broadcast %19 : vector<16x1xf32> to vector<16x32xf32>
    %21 = arith.subf %10, %20 : vector<16x32xf32>
    %22 = arith.mulf %21, %21 : vector<16x32xf32>
    %cst_15 = arith.constant dense<0.000000e+00> : vector<16xf32>
    %23 = vector.multi_reduction <add>, %22, %cst_15 [1] : vector<16x32xf32> to vector<16xf32>
    %24 = vector.shape_cast %23 : vector<16xf32> to vector<16x1xf32>
    %cst_16 = arith.constant 3.200000e+01 : f32
    %25 = vector.broadcast %cst_16 : f32 to vector<16x1xf32>
    %26 = arith.divf %24, %25 : vector<16x1xf32>
    %27 = vector.broadcast %19 : vector<16x1xf32> to vector<16x32xf32>
    %28 = arith.subf %10, %27 : vector<16x32xf32>
    %cst_17 = arith.constant 9.99999974E-6 : f32
    %29 = vector.broadcast %cst_17 : f32 to vector<16x1xf32>
    %30 = arith.addf %26, %29 : vector<16x1xf32>
    %31 = math.rsqrt %30 : vector<16x1xf32>
    %32 = vector.broadcast %31 : vector<16x1xf32> to vector<16x32xf32>
    %33 = arith.mulf %28, %32 : vector<16x32xf32>
    %34 = vector.broadcast %13 : vector<1x32xf32> to vector<16x32xf32>
    %35 = arith.mulf %33, %34 : vector<16x32xf32>
    %36 = vector.broadcast %15 : vector<1x32xf32> to vector<16x32xf32>
    %37 = arith.addf %35, %36 : vector<16x32xf32>
    %38 = arith.truncf %37 : vector<16x32xf32> to vector<16x32xbf16>
    %39 = vector.shape_cast %38 : vector<16x32xbf16> to vector<1x16x32xbf16>
    %40 = vector.shape_cast %39 : vector<1x16x32xbf16> to vector<1x16x32xbf16>
    %41 = vector.broadcast %40 : vector<1x16x32xbf16> to vector<4x16x32xbf16>
    %c0_18 = arith.constant 0 : index
    %c0_19 = arith.constant 0 : index
    %c0_20 = arith.constant 0 : index
    %42 = vector.load %arg6[%c0_18, %c0_19, %c0_20] : memref<8x32x24xbf16, #tpu.memory_space<vmem>>, vector<4x32x24xbf16>
    "tpu.trace_start"() <{level = 10 : i32, message = "hnc,hcd->hnd"}> : () -> ()
    %cst_21 = arith.constant dense<0.000000e+00> : vector<4x16x24xf32>
    %43 = tpu.matmul %41, %42, %cst_21 {dimension_numbers = #tpu.dot_dimension_numbers<[2], [1], [1], [2], [0, 0, 0, 1, 1, 2], [0], [0]>} : vector<4x16x32xbf16>, vector<4x32x24xbf16>, vector<4x16x24xf32> -> vector<4x16x24xf32>
    "tpu.trace_stop"() : () -> ()
    %44 = arith.truncf %43 : vector<4x16x24xf32> to vector<4x16x24xbf16>
    %45 = vector.extract_strided_slice %44 {offsets = [0, 0, 0], sizes = [4, 16, 8], strides = [1, 1, 1]} : vector<4x16x24xbf16> to vector<4x16x8xbf16>
    %46 = vector.shape_cast %45 : vector<4x16x8xbf16> to vector<64x8xbf16>
    %47 = vector.extract_strided_slice %44 {offsets = [0, 0, 8], sizes = [4, 16, 8], strides = [1, 1, 1]} : vector<4x16x24xbf16> to vector<4x16x8xbf16>
    %48 = vector.shape_cast %47 : vector<4x16x8xbf16> to vector<64x8xbf16>
    %49 = vector.extract_strided_slice %44 {offsets = [0, 0, 16], sizes = [4, 16, 8], strides = [1, 1, 1]} : vector<4x16x24xbf16> to vector<4x16x8xbf16>
    %50 = vector.shape_cast %49 : vector<4x16x8xbf16> to vector<64x8xbf16>
    %cst_22 = arith.constant dense<0.000000e+00> : vector<64x64xf32>
    %51 = tpu.matmul %46, %48, %cst_22 {dimension_numbers = #tpu.dot_dimension_numbers<[1], [1], [0], [0], [0, 0, 1, 0], [], []>} : vector<64x8xbf16>, vector<64x8xbf16>, vector<64x64xf32> -> vector<64x64xf32>
    %52 = arith.addf %51, %11 : vector<64x64xf32>
    %cst_23 = arith.constant dense<0xFF800000> : vector<64xf32>
    %53 = vector.multi_reduction <maximumf>, %52, %cst_23 [1] : vector<64x64xf32> to vector<64xf32>
    %54 = vector.shape_cast %53 : vector<64xf32> to vector<64x1xf32>
    %55 = vector.broadcast %54 : vector<64x1xf32> to vector<64x64xf32>
    %56 = arith.subf %52, %55 : vector<64x64xf32>
    %57 = math.exp %56 : vector<64x64xf32>
    %cst_24 = arith.constant dense<0.000000e+00> : vector<64xf32>
    %58 = vector.multi_reduction <add>, %57, %cst_24 [1] : vector<64x64xf32> to vector<64xf32>
    %59 = vector.shape_cast %58 : vector<64xf32> to vector<64x1xf32>
    %60 = tpu.reciprocal %59 {approx = true} : vector<64x1xf32> -> vector<64x1xf32>
    %61 = vector.broadcast %60 : vector<64x1xf32> to vector<64x64xf32>
    %62 = arith.mulf %57, %61 : vector<64x64xf32>
    %63 = arith.truncf %62 : vector<64x64xf32> to vector<64x64xbf16>
    %cst_25 = arith.constant dense<0.000000e+00> : vector<64x8xf32>
    %64 = tpu.matmul %63, %50, %cst_25 {dimension_numbers = #tpu.dot_dimension_numbers<[1], [0], [0], [1], [0, 0, 1, 1], [], []>} : vector<64x64xbf16>, vector<64x8xbf16>, vector<64x8xf32> -> vector<64x8xf32>
    %65 = vector.shape_cast %64 : vector<64x8xf32> to vector<4x16x8xf32>
    %66 = arith.truncf %65 : vector<4x16x8xf32> to vector<4x16x8xbf16>
    %c0_26 = arith.constant 0 : index
    %c0_27 = arith.constant 0 : index
    %c0_28 = arith.constant 0 : index
    %67 = vector.load %arg7[%c0_26, %c0_27, %c0_28] : memref<8x8x32xbf16, #tpu.memory_space<vmem>>, vector<4x8x32xbf16>
    "tpu.trace_start"() <{level = 10 : i32, message = "hnd,hdc->hnc"}> : () -> ()
    %cst_29 = arith.constant dense<0.000000e+00> : vector<4x16x32xf32>
    %68 = tpu.matmul %66, %67, %cst_29 {dimension_numbers = #tpu.dot_dimension_numbers<[2], [1], [1], [2], [0, 0, 0, 1, 1, 2], [0], [0]>} : vector<4x16x8xbf16>, vector<4x8x32xbf16>, vector<4x16x32xf32> -> vector<4x16x32xf32>
    "tpu.trace_stop"() : () -> ()
    %cst_30 = arith.constant dense<0.000000e+00> : vector<16x32xf32>
    %69 = vector.multi_reduction <add>, %68, %cst_30 [0] : vector<4x16x32xf32> to vector<16x32xf32>
    %70 = arith.addf %10, %69 : vector<16x32xf32>
    %c0_31 = arith.constant 0 : index
    %c0_32 = arith.constant 0 : index
    %c0_33 = arith.constant 0 : index
    %71 = vector.load %arg8[%c0_31, %c0_32, %c0_33] : memref<2x1x32xf32, #tpu.memory_space<vmem>>, vector<1x1x32xf32>
    %72 = vector.shape_cast %71 : vector<1x1x32xf32> to vector<1x32xf32>
    %73 = vector.broadcast %72 : vector<1x32xf32> to vector<16x32xf32>
    %74 = arith.addf %70, %73 : vector<16x32xf32>
    %c0_34 = arith.constant 0 : index
    %c0_35 = arith.constant 0 : index
    %c0_36 = arith.constant 0 : index
    %75 = vector.load %arg9[%c0_34, %c0_35, %c0_36] : memref<2x1x32xf32, #tpu.memory_space<vmem>>, vector<1x1x32xf32>
    %76 = vector.shape_cast %75 : vector<1x1x32xf32> to vector<1x32xf32>
    %c0_37 = arith.constant 0 : index
    %c0_38 = arith.constant 0 : index
    %c0_39 = arith.constant 0 : index
    %77 = vector.load %arg10[%c0_37, %c0_38, %c0_39] : memref<2x1x32xf32, #tpu.memory_space<vmem>>, vector<1x1x32xf32>
    %78 = vector.shape_cast %77 : vector<1x1x32xf32> to vector<1x32xf32>
    %cst_40 = arith.constant dense<0.000000e+00> : vector<16xf32>
    %79 = vector.multi_reduction <add>, %74, %cst_40 [1] : vector<16x32xf32> to vector<16xf32>
    %80 = vector.shape_cast %79 : vector<16xf32> to vector<16x1xf32>
    %cst_41 = arith.constant 3.200000e+01 : f32
    %81 = vector.broadcast %cst_41 : f32 to vector<16x1xf32>
    %82 = arith.divf %80, %81 : vector<16x1xf32>
    %83 = vector.broadcast %82 : vector<16x1xf32> to vector<16x32xf32>
    %84 = arith.subf %74, %83 : vector<16x32xf32>
    %85 = arith.mulf %84, %84 : vector<16x32xf32>
    %cst_42 = arith.constant dense<0.000000e+00> : vector<16xf32>
    %86 = vector.multi_reduction <add>, %85, %cst_42 [1] : vector<16x32xf32> to vector<16xf32>
    %87 = vector.shape_cast %86 : vector<16xf32> to vector<16x1xf32>
    %cst_43 = arith.constant 3.200000e+01 : f32
    %88 = vector.broadcast %cst_43 : f32 to vector<16x1xf32>
    %89 = arith.divf %87, %88 : vector<16x1xf32>
    %90 = vector.broadcast %82 : vector<16x1xf32> to vector<16x32xf32>
    %91 = arith.subf %74, %90 : vector<16x32xf32>
    %cst_44 = arith.constant 9.99999974E-6 : f32
    %92 = vector.broadcast %cst_44 : f32 to vector<16x1xf32>
    %93 = arith.addf %89, %92 : vector<16x1xf32>
    %94 = math.rsqrt %93 : vector<16x1xf32>
    %95 = vector.broadcast %94 : vector<16x1xf32> to vector<16x32xf32>
    %96 = arith.mulf %91, %95 : vector<16x32xf32>
    %97 = vector.broadcast %76 : vector<1x32xf32> to vector<16x32xf32>
    %98 = arith.mulf %96, %97 : vector<16x32xf32>
    %99 = vector.broadcast %78 : vector<1x32xf32> to vector<16x32xf32>
    %100 = arith.addf %98, %99 : vector<16x32xf32>
    %101 = arith.truncf %100 : vector<16x32xf32> to vector<16x32xbf16>
    %c0_45 = arith.constant 0 : index
    %c0_46 = arith.constant 0 : index
    %c0_47 = arith.constant 0 : index
    %102 = vector.load %arg11[%c0_45, %c0_46, %c0_47] : memref<2x32x128xbf16, #tpu.memory_space<vmem>>, vector<1x32x128xbf16>
    %103 = vector.shape_cast %102 : vector<1x32x128xbf16> to vector<32x128xbf16>
    %cst_48 = arith.constant dense<0.000000e+00> : vector<16x128xf32>
    %104 = tpu.matmul %101, %103, %cst_48 {dimension_numbers = #tpu.dot_dimension_numbers<[1], [0], [0], [1], [0, 0, 1, 1], [], []>} : vector<16x32xbf16>, vector<32x128xbf16>, vector<16x128xf32> -> vector<16x128xf32>
    %c0_49 = arith.constant 0 : index
    %c0_50 = arith.constant 0 : index
    %c0_51 = arith.constant 0 : index
    %105 = vector.load %arg12[%c0_49, %c0_50, %c0_51] : memref<2x1x128xf32, #tpu.memory_space<vmem>>, vector<1x1x128xf32>
    %106 = vector.shape_cast %105 : vector<1x1x128xf32> to vector<1x128xf32>
    %107 = vector.broadcast %106 : vector<1x128xf32> to vector<16x128xf32>
    %108 = arith.addf %104, %107 : vector<16x128xf32>
    %cst_52 = arith.constant 0.000000e+00 : f32
    %109 = vector.broadcast %cst_52 : f32 to vector<16x128xf32>
    %110 = arith.maximumf %108, %109 : vector<16x128xf32>
    %111 = arith.truncf %110 : vector<16x128xf32> to vector<16x128xbf16>
    %c0_53 = arith.constant 0 : index
    %c0_54 = arith.constant 0 : index
    %c0_55 = arith.constant 0 : index
    %112 = vector.load %arg13[%c0_53, %c0_54, %c0_55] : memref<2x128x32xbf16, #tpu.memory_space<vmem>>, vector<1x128x32xbf16>
    %113 = vector.shape_cast %112 : vector<1x128x32xbf16> to vector<128x32xbf16>
    %cst_56 = arith.constant dense<0.000000e+00> : vector<16x32xf32>
    %114 = tpu.matmul %111, %113, %cst_56 {dimension_numbers = #tpu.dot_dimension_numbers<[1], [0], [0], [1], [0, 0, 1, 1], [], []>} : vector<16x128xbf16>, vector<128x32xbf16>, vector<16x32xf32> -> vector<16x32xf32>
    %115 = arith.addf %74, %114 : vector<16x32xf32>
    %c0_57 = arith.constant 0 : index
    %c0_58 = arith.constant 0 : index
    %c0_59 = arith.constant 0 : index
    %116 = vector.load %arg14[%c0_57, %c0_58, %c0_59] : memref<2x1x32xf32, #tpu.memory_space<vmem>>, vector<1x1x32xf32>
    %117 = vector.shape_cast %116 : vector<1x1x32xf32> to vector<1x32xf32>
    %118 = vector.broadcast %117 : vector<1x32xf32> to vector<16x32xf32>
    %119 = arith.addf %115, %118 : vector<16x32xf32>
    %c1 = arith.constant 1 : index
    %c0_60 = arith.constant 0 : index
    %c0_61 = arith.constant 0 : index
    %120 = vector.load %arg4[%c1, %c0_60, %c0_61] : memref<2x1x32xf32, #tpu.memory_space<vmem>>, vector<1x1x32xf32>
    %121 = vector.shape_cast %120 : vector<1x1x32xf32> to vector<1x32xf32>
    %c1_62 = arith.constant 1 : index
    %c0_63 = arith.constant 0 : index
    %c0_64 = arith.constant 0 : index
    %122 = vector.load %arg5[%c1_62, %c0_63, %c0_64] : memref<2x1x32xf32, #tpu.memory_space<vmem>>, vector<1x1x32xf32>
    %123 = vector.shape_cast %122 : vector<1x1x32xf32> to vector<1x32xf32>
    %cst_65 = arith.constant dense<0.000000e+00> : vector<16xf32>
    %124 = vector.multi_reduction <add>, %119, %cst_65 [1] : vector<16x32xf32> to vector<16xf32>
    %125 = vector.shape_cast %124 : vector<16xf32> to vector<16x1xf32>
    %cst_66 = arith.constant 3.200000e+01 : f32
    %126 = vector.broadcast %cst_66 : f32 to vector<16x1xf32>
    %127 = arith.divf %125, %126 : vector<16x1xf32>
    %128 = vector.broadcast %127 : vector<16x1xf32> to vector<16x32xf32>
    %129 = arith.subf %119, %128 : vector<16x32xf32>
    %130 = arith.mulf %129, %129 : vector<16x32xf32>
    %cst_67 = arith.constant dense<0.000000e+00> : vector<16xf32>
    %131 = vector.multi_reduction <add>, %130, %cst_67 [1] : vector<16x32xf32> to vector<16xf32>
    %132 = vector.shape_cast %131 : vector<16xf32> to vector<16x1xf32>
    %cst_68 = arith.constant 3.200000e+01 : f32
    %133 = vector.broadcast %cst_68 : f32 to vector<16x1xf32>
    %134 = arith.divf %132, %133 : vector<16x1xf32>
    %135 = vector.broadcast %127 : vector<16x1xf32> to vector<16x32xf32>
    %136 = arith.subf %119, %135 : vector<16x32xf32>
    %cst_69 = arith.constant 9.99999974E-6 : f32
    %137 = vector.broadcast %cst_69 : f32 to vector<16x1xf32>
    %138 = arith.addf %134, %137 : vector<16x1xf32>
    %139 = math.rsqrt %138 : vector<16x1xf32>
    %140 = vector.broadcast %139 : vector<16x1xf32> to vector<16x32xf32>
    %141 = arith.mulf %136, %140 : vector<16x32xf32>
    %142 = vector.broadcast %121 : vector<1x32xf32> to vector<16x32xf32>
    %143 = arith.mulf %141, %142 : vector<16x32xf32>
    %144 = vector.broadcast %123 : vector<1x32xf32> to vector<16x32xf32>
    %145 = arith.addf %143, %144 : vector<16x32xf32>
    %146 = arith.truncf %145 : vector<16x32xf32> to vector<16x32xbf16>
    %147 = vector.shape_cast %146 : vector<16x32xbf16> to vector<1x16x32xbf16>
    %148 = vector.shape_cast %147 : vector<1x16x32xbf16> to vector<1x16x32xbf16>
    %149 = vector.broadcast %148 : vector<1x16x32xbf16> to vector<4x16x32xbf16>
    %c4 = arith.constant 4 : index
    %c0_70 = arith.constant 0 : index
    %c0_71 = arith.constant 0 : index
    %150 = vector.load %arg6[%c4, %c0_70, %c0_71] : memref<8x32x24xbf16, #tpu.memory_space<vmem>>, vector<4x32x24xbf16>
    "tpu.trace_start"() <{level = 10 : i32, message = "hnc,hcd->hnd"}> : () -> ()
    %cst_72 = arith.constant dense<0.000000e+00> : vector<4x16x24xf32>
    %151 = tpu.matmul %149, %150, %cst_72 {dimension_numbers = #tpu.dot_dimension_numbers<[2], [1], [1], [2], [0, 0, 0, 1, 1, 2], [0], [0]>} : vector<4x16x32xbf16>, vector<4x32x24xbf16>, vector<4x16x24xf32> -> vector<4x16x24xf32>
    "tpu.trace_stop"() : () -> ()
    %152 = arith.truncf %151 : vector<4x16x24xf32> to vector<4x16x24xbf16>
    %153 = vector.extract_strided_slice %152 {offsets = [0, 0, 0], sizes = [4, 16, 8], strides = [1, 1, 1]} : vector<4x16x24xbf16> to vector<4x16x8xbf16>
    %154 = vector.shape_cast %153 : vector<4x16x8xbf16> to vector<64x8xbf16>
    %155 = vector.extract_strided_slice %152 {offsets = [0, 0, 8], sizes = [4, 16, 8], strides = [1, 1, 1]} : vector<4x16x24xbf16> to vector<4x16x8xbf16>
    %156 = vector.shape_cast %155 : vector<4x16x8xbf16> to vector<64x8xbf16>
    %157 = vector.extract_strided_slice %152 {offsets = [0, 0, 16], sizes = [4, 16, 8], strides = [1, 1, 1]} : vector<4x16x24xbf16> to vector<4x16x8xbf16>
    %158 = vector.shape_cast %157 : vector<4x16x8xbf16> to vector<64x8xbf16>
    %cst_73 = arith.constant dense<0.000000e+00> : vector<64x64xf32>
    %159 = tpu.matmul %154, %156, %cst_73 {dimension_numbers = #tpu.dot_dimension_numbers<[1], [1], [0], [0], [0, 0, 1, 0], [], []>} : vector<64x8xbf16>, vector<64x8xbf16>, vector<64x64xf32> -> vector<64x64xf32>
    %160 = arith.addf %159, %11 : vector<64x64xf32>
    %cst_74 = arith.constant dense<0xFF800000> : vector<64xf32>
    %161 = vector.multi_reduction <maximumf>, %160, %cst_74 [1] : vector<64x64xf32> to vector<64xf32>
    %162 = vector.shape_cast %161 : vector<64xf32> to vector<64x1xf32>
    %163 = vector.broadcast %162 : vector<64x1xf32> to vector<64x64xf32>
    %164 = arith.subf %160, %163 : vector<64x64xf32>
    %165 = math.exp %164 : vector<64x64xf32>
    %cst_75 = arith.constant dense<0.000000e+00> : vector<64xf32>
    %166 = vector.multi_reduction <add>, %165, %cst_75 [1] : vector<64x64xf32> to vector<64xf32>
    %167 = vector.shape_cast %166 : vector<64xf32> to vector<64x1xf32>
    %168 = tpu.reciprocal %167 {approx = true} : vector<64x1xf32> -> vector<64x1xf32>
    %169 = vector.broadcast %168 : vector<64x1xf32> to vector<64x64xf32>
    %170 = arith.mulf %165, %169 : vector<64x64xf32>
    %171 = arith.truncf %170 : vector<64x64xf32> to vector<64x64xbf16>
    %cst_76 = arith.constant dense<0.000000e+00> : vector<64x8xf32>
    %172 = tpu.matmul %171, %158, %cst_76 {dimension_numbers = #tpu.dot_dimension_numbers<[1], [0], [0], [1], [0, 0, 1, 1], [], []>} : vector<64x64xbf16>, vector<64x8xbf16>, vector<64x8xf32> -> vector<64x8xf32>
    %173 = vector.shape_cast %172 : vector<64x8xf32> to vector<4x16x8xf32>
    %174 = arith.truncf %173 : vector<4x16x8xf32> to vector<4x16x8xbf16>
    %c4_77 = arith.constant 4 : index
    %c0_78 = arith.constant 0 : index
    %c0_79 = arith.constant 0 : index
    %175 = vector.load %arg7[%c4_77, %c0_78, %c0_79] : memref<8x8x32xbf16, #tpu.memory_space<vmem>>, vector<4x8x32xbf16>
    "tpu.trace_start"() <{level = 10 : i32, message = "hnd,hdc->hnc"}> : () -> ()
    %cst_80 = arith.constant dense<0.000000e+00> : vector<4x16x32xf32>
    %176 = tpu.matmul %174, %175, %cst_80 {dimension_numbers = #tpu.dot_dimension_numbers<[2], [1], [1], [2], [0, 0, 0, 1, 1, 2], [0], [0]>} : vector<4x16x8xbf16>, vector<4x8x32xbf16>, vector<4x16x32xf32> -> vector<4x16x32xf32>
    "tpu.trace_stop"() : () -> ()
    %cst_81 = arith.constant dense<0.000000e+00> : vector<16x32xf32>
    %177 = vector.multi_reduction <add>, %176, %cst_81 [0] : vector<4x16x32xf32> to vector<16x32xf32>
    %178 = arith.addf %119, %177 : vector<16x32xf32>
    %c1_82 = arith.constant 1 : index
    %c0_83 = arith.constant 0 : index
    %c0_84 = arith.constant 0 : index
    %179 = vector.load %arg8[%c1_82, %c0_83, %c0_84] : memref<2x1x32xf32, #tpu.memory_space<vmem>>, vector<1x1x32xf32>
    %180 = vector.shape_cast %179 : vector<1x1x32xf32> to vector<1x32xf32>
    %181 = vector.broadcast %180 : vector<1x32xf32> to vector<16x32xf32>
    %182 = arith.addf %178, %181 : vector<16x32xf32>
    %c1_85 = arith.constant 1 : index
    %c0_86 = arith.constant 0 : index
    %c0_87 = arith.constant 0 : index
    %183 = vector.load %arg9[%c1_85, %c0_86, %c0_87] : memref<2x1x32xf32, #tpu.memory_space<vmem>>, vector<1x1x32xf32>
    %184 = vector.shape_cast %183 : vector<1x1x32xf32> to vector<1x32xf32>
    %c1_88 = arith.constant 1 : index
    %c0_89 = arith.constant 0 : index
    %c0_90 = arith.constant 0 : index
    %185 = vector.load %arg10[%c1_88, %c0_89, %c0_90] : memref<2x1x32xf32, #tpu.memory_space<vmem>>, vector<1x1x32xf32>
    %186 = vector.shape_cast %185 : vector<1x1x32xf32> to vector<1x32xf32>
    %cst_91 = arith.constant dense<0.000000e+00> : vector<16xf32>
    %187 = vector.multi_reduction <add>, %182, %cst_91 [1] : vector<16x32xf32> to vector<16xf32>
    %188 = vector.shape_cast %187 : vector<16xf32> to vector<16x1xf32>
    %cst_92 = arith.constant 3.200000e+01 : f32
    %189 = vector.broadcast %cst_92 : f32 to vector<16x1xf32>
    %190 = arith.divf %188, %189 : vector<16x1xf32>
    %191 = vector.broadcast %190 : vector<16x1xf32> to vector<16x32xf32>
    %192 = arith.subf %182, %191 : vector<16x32xf32>
    %193 = arith.mulf %192, %192 : vector<16x32xf32>
    %cst_93 = arith.constant dense<0.000000e+00> : vector<16xf32>
    %194 = vector.multi_reduction <add>, %193, %cst_93 [1] : vector<16x32xf32> to vector<16xf32>
    %195 = vector.shape_cast %194 : vector<16xf32> to vector<16x1xf32>
    %cst_94 = arith.constant 3.200000e+01 : f32
    %196 = vector.broadcast %cst_94 : f32 to vector<16x1xf32>
    %197 = arith.divf %195, %196 : vector<16x1xf32>
    %198 = vector.broadcast %190 : vector<16x1xf32> to vector<16x32xf32>
    %199 = arith.subf %182, %198 : vector<16x32xf32>
    %cst_95 = arith.constant 9.99999974E-6 : f32
    %200 = vector.broadcast %cst_95 : f32 to vector<16x1xf32>
    %201 = arith.addf %197, %200 : vector<16x1xf32>
    %202 = math.rsqrt %201 : vector<16x1xf32>
    %203 = vector.broadcast %202 : vector<16x1xf32> to vector<16x32xf32>
    %204 = arith.mulf %199, %203 : vector<16x32xf32>
    %205 = vector.broadcast %184 : vector<1x32xf32> to vector<16x32xf32>
    %206 = arith.mulf %204, %205 : vector<16x32xf32>
    %207 = vector.broadcast %186 : vector<1x32xf32> to vector<16x32xf32>
    %208 = arith.addf %206, %207 : vector<16x32xf32>
    %209 = arith.truncf %208 : vector<16x32xf32> to vector<16x32xbf16>
    %c1_96 = arith.constant 1 : index
    %c0_97 = arith.constant 0 : index
    %c0_98 = arith.constant 0 : index
    %210 = vector.load %arg11[%c1_96, %c0_97, %c0_98] : memref<2x32x128xbf16, #tpu.memory_space<vmem>>, vector<1x32x128xbf16>
    %211 = vector.shape_cast %210 : vector<1x32x128xbf16> to vector<32x128xbf16>
    %cst_99 = arith.constant dense<0.000000e+00> : vector<16x128xf32>
    %212 = tpu.matmul %209, %211, %cst_99 {dimension_numbers = #tpu.dot_dimension_numbers<[1], [0], [0], [1], [0, 0, 1, 1], [], []>} : vector<16x32xbf16>, vector<32x128xbf16>, vector<16x128xf32> -> vector<16x128xf32>
    %c1_100 = arith.constant 1 : index
    %c0_101 = arith.constant 0 : index
    %c0_102 = arith.constant 0 : index
    %213 = vector.load %arg12[%c1_100, %c0_101, %c0_102] : memref<2x1x128xf32, #tpu.memory_space<vmem>>, vector<1x1x128xf32>
    %214 = vector.shape_cast %213 : vector<1x1x128xf32> to vector<1x128xf32>
    %215 = vector.broadcast %214 : vector<1x128xf32> to vector<16x128xf32>
    %216 = arith.addf %212, %215 : vector<16x128xf32>
    %cst_103 = arith.constant 0.000000e+00 : f32
    %217 = vector.broadcast %cst_103 : f32 to vector<16x128xf32>
    %218 = arith.maximumf %216, %217 : vector<16x128xf32>
    %219 = arith.truncf %218 : vector<16x128xf32> to vector<16x128xbf16>
    %c1_104 = arith.constant 1 : index
    %c0_105 = arith.constant 0 : index
    %c0_106 = arith.constant 0 : index
    %220 = vector.load %arg13[%c1_104, %c0_105, %c0_106] : memref<2x128x32xbf16, #tpu.memory_space<vmem>>, vector<1x128x32xbf16>
    %221 = vector.shape_cast %220 : vector<1x128x32xbf16> to vector<128x32xbf16>
    %cst_107 = arith.constant dense<0.000000e+00> : vector<16x32xf32>
    %222 = tpu.matmul %219, %221, %cst_107 {dimension_numbers = #tpu.dot_dimension_numbers<[1], [0], [0], [1], [0, 0, 1, 1], [], []>} : vector<16x128xbf16>, vector<128x32xbf16>, vector<16x32xf32> -> vector<16x32xf32>
    %223 = arith.addf %182, %222 : vector<16x32xf32>
    %c1_108 = arith.constant 1 : index
    %c0_109 = arith.constant 0 : index
    %c0_110 = arith.constant 0 : index
    %224 = vector.load %arg14[%c1_108, %c0_109, %c0_110] : memref<2x1x32xf32, #tpu.memory_space<vmem>>, vector<1x1x32xf32>
    %225 = vector.shape_cast %224 : vector<1x1x32xf32> to vector<1x32xf32>
    %226 = vector.broadcast %225 : vector<1x32xf32> to vector<16x32xf32>
    %227 = arith.addf %223, %226 : vector<16x32xf32>
    %c0_111 = arith.constant 0 : index
    %c0_112 = arith.constant 0 : index
    %228 = vector.load %arg15[%c0_111, %c0_112] : memref<1x32xf32, #tpu.memory_space<vmem>>, vector<1x32xf32>
    %c0_113 = arith.constant 0 : index
    %c0_114 = arith.constant 0 : index
    %229 = vector.load %arg16[%c0_113, %c0_114] : memref<1x32xf32, #tpu.memory_space<vmem>>, vector<1x32xf32>
    %cst_115 = arith.constant dense<0.000000e+00> : vector<16xf32>
    %230 = vector.multi_reduction <add>, %227, %cst_115 [1] : vector<16x32xf32> to vector<16xf32>
    %231 = vector.shape_cast %230 : vector<16xf32> to vector<16x1xf32>
    %cst_116 = arith.constant 3.200000e+01 : f32
    %232 = vector.broadcast %cst_116 : f32 to vector<16x1xf32>
    %233 = arith.divf %231, %232 : vector<16x1xf32>
    %234 = vector.broadcast %233 : vector<16x1xf32> to vector<16x32xf32>
    %235 = arith.subf %227, %234 : vector<16x32xf32>
    %236 = arith.mulf %235, %235 : vector<16x32xf32>
    %cst_117 = arith.constant dense<0.000000e+00> : vector<16xf32>
    %237 = vector.multi_reduction <add>, %236, %cst_117 [1] : vector<16x32xf32> to vector<16xf32>
    %238 = vector.shape_cast %237 : vector<16xf32> to vector<16x1xf32>
    %cst_118 = arith.constant 3.200000e+01 : f32
    %239 = vector.broadcast %cst_118 : f32 to vector<16x1xf32>
    %240 = arith.divf %238, %239 : vector<16x1xf32>
    %241 = vector.broadcast %233 : vector<16x1xf32> to vector<16x32xf32>
    %242 = arith.subf %227, %241 : vector<16x32xf32>
    %cst_119 = arith.constant 9.99999974E-6 : f32
    %243 = vector.broadcast %cst_119 : f32 to vector<16x1xf32>
    %244 = arith.addf %240, %243 : vector<16x1xf32>
    %245 = math.rsqrt %244 : vector<16x1xf32>
    %246 = vector.broadcast %245 : vector<16x1xf32> to vector<16x32xf32>
    %247 = arith.mulf %242, %246 : vector<16x32xf32>
    %248 = vector.broadcast %228 : vector<1x32xf32> to vector<16x32xf32>
    %249 = arith.mulf %247, %248 : vector<16x32xf32>
    %250 = vector.broadcast %229 : vector<1x32xf32> to vector<16x32xf32>
    %251 = arith.addf %249, %250 : vector<16x32xf32>
    %252 = arith.truncf %251 : vector<16x32xf32> to vector<16x32xbf16>
    %c0_120 = arith.constant 0 : index
    %c0_121 = arith.constant 0 : index
    %253 = vector.load %arg17[%c0_120, %c0_121] : memref<32x128xbf16, #tpu.memory_space<vmem>>, vector<32x128xbf16>
    %cst_122 = arith.constant dense<0.000000e+00> : vector<16x128xf32>
    %254 = tpu.matmul %252, %253, %cst_122 {dimension_numbers = #tpu.dot_dimension_numbers<[1], [0], [0], [1], [0, 0, 1, 1], [], []>} : vector<16x32xbf16>, vector<32x128xbf16>, vector<16x128xf32> -> vector<16x128xf32>
    %c0_123 = arith.constant 0 : index
    %c0_124 = arith.constant 0 : index
    %255 = vector.load %arg18[%c0_123, %c0_124] : memref<1x128xf32, #tpu.memory_space<vmem>>, vector<1x128xf32>
    %256 = vector.broadcast %255 : vector<1x128xf32> to vector<16x128xf32>
    %257 = arith.addf %254, %256 : vector<16x128xf32>
    %c0_125 = arith.constant 0 : index
    %c0_126 = arith.constant 0 : index
    %258 = vector.load %arg19[%c0_125, %c0_126] : memref<16x128xf32, #tpu.memory_space<vmem>>, vector<16x128xf32>
    tpu.vector_store %arg19[%c0_125, %c0_126], %257 {strides = array<i32>} : memref<16x128xf32, #tpu.memory_space<vmem>>, vector<16x128xf32>,
    return
  }
}

</mosaic_0001>

<bundles_post_ra>
// kernel: tpu_custom_call.1
= control target key start
LH: loop header
LB: loop body
LE: loop exit
PB: predicated region body
PF: predicated region fallthrough
CT: control target
= control target key end

     0   :  { %s3781_s0 = inlined_call_operand.vmem [shape: s32[16,1], index: 0, kind: input, shape index: {}]   ;;  %s3782_s1 = inlined_call_operand.vmem [shape: f32[128,32], index: 1, kind: input, shape index: {}]   ;;  %s3783_s2 = inlined_call_operand.vmem [shape: f32[8,32], index: 2, kind: input, shape index: {}]   ;;  %s3784_s3 = inlined_call_operand.vmem [shape: f32[64,64], index: 3, kind: input, shape index: {}]   ;;  %s3785_s4 = inlined_call_operand.vmem [shape: f32[2,1,32], index: 4, kind: input, shape index: {}]   ;;  %s3786_s5 = inlined_call_operand.vmem [shape: f32[2,1,32], index: 5, kind: input, shape index: {}]   ;;  %s3787_s6 = inlined_call_operand.vmem [shape: bf16[8,32,24], index: 6, kind: input, shape index: {}]   ;;  %s3788_s7 = inlined_call_operand.vmem [shape: bf16[8,8,32], index: 7, kind: input, shape index: {}]   ;;  %s3789_s8 = inlined_call_operand.vmem [shape: f32[2,1,32], index: 8, kind: input, shape index: {}]   ;;  %s3790_s9 = inlined_call_operand.vmem [shape: f32[2,1,32], index: 9, kind: input, shape index: {}]   ;;  %s3791_s10 = inlined_call_operand.vmem [shape: f32[2,1,32], index: 10, kind: input, shape index: {}]   ;;  %s3792_s11 = inlined_call_operand.vmem [shape: bf16[2,32,128], index: 11, kind: input, shape index: {}]   ;;  %s3793_s12 = inlined_call_operand.vmem [shape: f32[2,1,128], index: 12, kind: input, shape index: {}]   ;;  %s3794_s13 = inlined_call_operand.vmem [shape: bf16[2,128,32], index: 13, kind: input, shape index: {}]   ;;  %s3795_s14 = inlined_call_operand.vmem [shape: f32[2,1,32], index: 14, kind: input, shape index: {}]   ;;  %s3796_s15 = inlined_call_operand.vmem [shape: f32[1,32], index: 15, kind: input, shape index: {}]   ;;  %s3797_s16 = inlined_call_operand.vmem [shape: f32[1,32], index: 16, kind: input, shape index: {}]   ;;  %s3798_s17 = inlined_call_operand.vmem [shape: bf16[32,128], index: 17, kind: input, shape index: {}]   ;;  %s3799_s18 = inlined_call_operand.vmem [shape: f32[1,128], index: 18, kind: input, shape index: {}]   ;;  %s3800_s19 = inlined_call_operand.hbm [shape: f32[16,128], index: 19, kind: output, shape index: {}]  }
   0x1   :  { %3805 = sst [smem:[#allocation5_spill]] %s3781_s0 }
   0x2   :  { %3806 = sst [smem:[#allocation6_spill]] %s3782_s1 }
   0x3   :  { %3807 = sst [smem:[#allocation7_spill]] %s3783_s2 }
   0x4   :  { %3808 = sst [smem:[#allocation8_spill]] %s3784_s3 }
   0x5   :  { %3809 = sst [smem:[#allocation9_spill]] %s3795_s14 }
   0x6   :  { %s3810_s20 = sld [smem:[#allocation5_spill]]  ;;  %v3049_v2 = vmov 0  }
   0x7   :  { %s3811_s14 = sld [smem:[#allocation6_spill]]  ;;  %2904 = vset.pattern.permute.xlu0 %v3049_v2 }
   0xc   :  { %v64_v0 = vld [vmem:[%s3810_s20] sm:$0xff]  ;;  %v65_v5 = vld [vmem:[%s3810_s20 + $0x8] sm:$0xff] }
   0xd   :  { %v95_v1 = vld [vmem:[%s3811_s14 + $0x78] sm:$0xff]  ;;  %v94_v3 = vld [vmem:[%s3811_s14 + $0x70] sm:$0xff]  ;;  %69 = vperm.xlu0 %2904, %v64_v0   ;;  %v93_v4 = vld [vmem:[%s3811_s14 + $0x68] sm:$0xff] }
   0xe   :  { %2612 = vmatprep.subr.mxu0 %v95_v1  ;;  %v92_v6 = vld [vmem:[%s3811_s14 + $0x60] sm:$0xff]  ;;  %v91_v7 = vld [vmem:[%s3811_s14 + $0x58] sm:$0xff]  ;;  %v90_v8 = vld [vmem:[%s3811_s14 + $0x50] sm:$0xff] }
   0xf   :  { %2613 = vmatpush3.msra.mxu0 %v95_v1  ;;  %v89_v9 = vld [vmem:[%s3811_s14 + $0x48] sm:$0xff]  ;;  %v88_v10 = vld [vmem:[%s3811_s14 + $0x40] sm:$0xff]  ;;  %v87_v11 = vld [vmem:[%s3811_s14 + $0x38] sm:$0xff] }
  0x10   :  { %2614 = vmatprep.subr.mxu0 %v94_v3  ;;  %v86_v12 = vld [vmem:[%s3811_s14 + $0x30] sm:$0xff]  ;;  %v85_v13 = vld [vmem:[%s3811_s14 + $0x28] sm:$0xff]  ;;  %v84_v14 = vld [vmem:[%s3811_s14 + $0x20] sm:$0xff] }
  0x11   :  { %2615 = vmatpush3.msra.mxu0 %v94_v3  ;;  %72 = vperm.xlu0 %2904, %v65_v5   ;;  %v83_v15 = vld [vmem:[%s3811_s14 + $0x18] sm:$0xff]  ;;  %v82_v16 = vld [vmem:[%s3811_s14 + $0x10] sm:$0xff]  ;;  %v81_v17 = vld [vmem:[%s3811_s14 + $0x8] sm:$0xff] }
  0x12   :  { %2616 = vmatprep.subr.mxu0 %v93_v4  ;;  %v80_v18 = vld [vmem:[%s3811_s14] sm:$0xff] }
  0x13   :  { %2617 = vmatpush3.msra.mxu0 %v93_v4 }
  0x14   :  { %2618 = vmatprep.subr.mxu0 %v92_v6 }
  0x15   :  { %2619 = vmatpush3.msra.mxu0 %v92_v6 }
  0x16   :  { %2620 = vmatprep.subr.mxu0 %v91_v7 }
  0x17   :  { %2621 = vmatpush3.msra.mxu0 %v91_v7 }
  0x18   :  { %2622 = vmatprep.subr.mxu0 %v90_v8 }
  0x19   :  { %2623 = vmatpush3.msra.mxu0 %v90_v8 }
  0x1a   :  { %2624 = vmatprep.subr.mxu0 %v89_v9 }
  0x1b   :  { %2625 = vmatpush3.msra.mxu0 %v89_v9 }
  0x1c   :  { %2626 = vmatprep.subr.mxu0 %v88_v10 }
  0x1d   :  { %2627 = vmatpush3.msra.mxu0 %v88_v10 }
  0x1e   :  { %2628 = vmatprep.subr.mxu0 %v87_v11 }
  0x1f   :  { %2629 = vmatpush3.msra.mxu0 %v87_v11 }
  0x20   :  { %2630 = vmatprep.subr.mxu0 %v86_v12 }
  0x21   :  { %2631 = vmatpush3.msra.mxu0 %v86_v12 }
  0x22   :  { %2632 = vmatprep.subr.mxu0 %v85_v13 }
  0x23   :  { %2633 = vmatpush3.msra.mxu0 %v85_v13 }
  0x24   :  { %2634 = vmatprep.subr.mxu0 %v84_v14 }
  0x25   :  { %2635 = vmatpush3.msra.mxu0 %v84_v14 }
  0x26   :  { %2636 = vmatprep.subr.mxu0 %v83_v15 }
  0x27   :  { %2637 = vmatpush3.msra.mxu0 %v83_v15 }
  0x28   :  { %2638 = vmatprep.subr.mxu0 %v82_v16 }
  0x29   :  { %2639 = vmatpush3.msra.mxu0 %v82_v16 }
  0x2a   :  { %2640 = vmatprep.subr.mxu0 %v81_v17 }
  0x2b   :  { %2641 = vmatpush3.msra.mxu0 %v81_v17 }
  0x2c   :  { %2642 = vmatprep.subr.mxu0 %v80_v18 }
  0x2d   :  { %24 = vsyncpa [#allocation3], 0  ;;  %2643 = vmatpush3.msra.mxu0 %v80_v18  ;;  %v66_v19 = vlaneseq  ;;  %v3050_v22 = vmov 1.0   ;;  %s3812_s14 = sld [smem:[#allocation7_spill]]  ;;  %vm182_vm2 = vcmask 261120   ;;  %v2905_v41 = vld [vmem:[%s3787_s6 + $0x8] sm:$0xff]  }
  0x2e   :  { %v3051_v42 = vmov 0.0   ;;  %vm3052_vm3 = vmmov 0   ;;  %v2906_v43 = vld [vmem:[%s3787_s6] sm:$0xff]   ;;  %v2907_v60 = vld [vmem:[%s3787_s6 + $0x18] sm:$0xff]   ;;  %v2908_v62 = vld [vmem:[%s3787_s6 + $0x10] sm:$0xff]   ;;  %vm474_vm4 = vcmask 64512  }
  0x2f   :  { %v67_v20 = vand.u32 127, %v66_v19  ;;  %2647 = vmatprep.subr.bf16.mxu1 %v3051_v42  ;;  %2651 = vmatprep.mubr.msk.bf16.mxu1 %vm3052_vm3, %v3051_v42  ;;  %v2358_v52 = vld [vmem:[%s3785_s4] ss:$0 sm:$0xff]  ;;  %v2909_v63 = vld [vmem:[%s3787_s6 + $0x28] sm:$0xff]   ;;  %v2911_v1 = vld [vmem:[%s3787_s6 + $0x38] sm:$0xff]   ;;  %s3053_s28 = smov 120  }
  0x30   :  { %2648 = vmatpush3.bf16.msra.mxu1 %v2905_v41  ;;  %v2359_v56 = vld [vmem:[%s3786_s5] ss:$0 sm:$0xff]  ;;  %v2912_v2 = vld [vmem:[%s3787_s6 + $0x30] sm:$0xff]   ;;  %s3813_s30 = sld [smem:[#allocation8_spill]]  ;;  %vm564_vm5 = vcmask 523264   ;;  %s3054_s20 = smov 112  }
  0x31   :  { %2649 = vmatprep.subr.bf16.mxu1 %v3051_v42  ;;  %v2910_v0 = vld [vmem:[%s3787_s6 + $0x20] sm:$0xff]   ;;  %vm757_vm6 = vcmask 1043456   ;;  %s3814_s26 = sld [smem:[#allocation9_spill]] }
  0x33   :  { %v96_v25 = vld [vmem:[%s3812_s14] sm:$0xff] }
  0x34   :  { %2650 = vmatpush3.bf16.msra.mxu1 %v2906_v43 }
  0x35   :  { %2655 = vmatprep.subr.bf16.mxu1 %v3051_v42 }
  0x36   :  { %v3333_v43 = vld [vmem:[%s3813_s30 + $0x18] sm:$0xff] }
  0x88   :  { %v70_v21 = vpop.permute.xlu0 %69 }
  0x89   :  { %vm74_vm0 = vcmp.eq.s32.totalorder %v70_v21, %v67_v20 }
  0x8a   :  { %2644 = vmatprep.mubr.msk.f32.mxu0 %vm74_vm0, %v3050_v22 }
  0x8c   :  { %v73_v23 = vpop.permute.xlu0 %72 }
  0x8d   :  { %vm75_vm1 = vcmp.eq.s32.totalorder %v73_v23, %v67_v20 }
  0x8e   :  { %2645 = vmatmul.mubr.msk.f32.vlgmr.msra.gmra.mxu0 %vm75_vm1, %v3050_v22 }
 0x14e   :  { %v2646_v24 = vpop.f32.mrf.mxu0 }
 0x14f   :  { %v3217_v28 = vadd.f32 %v2646_v24, %v96_v25 }
 0x150   :  { %v163_v26 = vpop.f32.mrf.mxu0 }
 0x151   :  { %v3215_v27 = vadd.f32 %v163_v26, %v96_v25  ;;  %v186_v30 = vsel %vm182_vm2, %v3217_v28, 0.0 }
 0x153   :  { %v183_v29 = vsel %vm182_vm2, %v3215_v27, 0.0 }
 0x154   :  { %184 = vadd.xlane.f32.xlu1 %v183_v29 }
 0x158   :  { %187 = vadd.xlane.f32.xlu1 %v186_v30 }
 0x1dd   :  { %v185_v31 = vpop.xlane.xlu1 %184 }
 0x1de   :  { %v190_v32 = vmul.f32 0.03125, %v185_v31 }
 0x1e0   :  { %v192_v33 = vsub.f32 %v3215_v27, %v190_v32 }
 0x1e1   :  { %v188_v34 = vpop.xlane.xlu1 %187 }
 0x1e2   :  { %v191_v35 = vmul.f32 0.03125, %v188_v34  ;;  %v194_v36 = vmul.f32 %v192_v33, %v192_v33  ;;  %v3315_v34 = vld [vmem:[%s3813_s30] sm:$0xff] }
 0x1e4   :  { %v193_v37 = vsub.f32 %v3217_v28, %v191_v35  ;;  %v196_v38 = vsel %vm182_vm2, %v194_v36, 0.0  ;;  %v3320_v35 = vld [vmem:[%s3813_s30 + $0x10] sm:$0xff] }
 0x1e5   :  { %197 = vadd.xlane.f32.xlu0 %v196_v38 }
 0x1e6   :  { %v195_v39 = vmul.f32 %v193_v37, %v193_v37 }
 0x1e8   :  { %v199_v40 = vsel %vm182_vm2, %v195_v39, 0.0  ;;  %v3326_v39 = vld [vmem:[%s3813_s30 + $0x8] sm:$0xff] }
 0x1e9   :  { %200 = vadd.xlane.f32.xlu1 %v199_v40 }
 0x26e   :  { %v198_v44 = vpop.xlane.xlu0 %197 }
 0x26f   :  { %v202_v45 = vmul.f32 0.03125, %v198_v44 }
 0x271   :  { %v204_v46 = vadd.f32 1e-05, %v202_v45 }
 0x272   :  { %v201_v47 = vpop.xlane.xlu1 %200 }
 0x273   :  { %2943 = vrsqrt.f32 %v204_v46  ;;  %v203_v48 = vmul.f32 0.03125, %v201_v47 }
 0x275   :  { %v205_v49 = vadd.f32 1e-05, %v203_v48 }
 0x277   :  { %2945 = vrsqrt.f32 %v205_v49 }
 0x280   :  { %v2944_v50 = vpop.eup %2943 }
 0x281   :  { %v208_v51 = vmul.f32 %v2944_v50, %v192_v33  ;;  %v3342_v50 = vld [vmem:[%s3813_s30 + $0x30] sm:$0xff] }
 0x283   :  { %v216_v55 = vmul.f32 %v2358_v52, %v208_v51 }
 0x284   :  { %v2946_v53 = vpop.eup %2945 }
 0x285   :  { %v209_v54 = vmul.f32 %v2946_v53, %v193_v37  ;;  %v224_v58 = vadd.f32 %v2359_v56, %v216_v55 }
 0x287   :  { %v217_v57 = vmul.f32 %v2358_v52, %v209_v54  ;;  %v3349_v54 = vld [vmem:[%s3813_s30 + $0x20] sm:$0xff] }
 0x289   :  { %v225_v59 = vadd.f32 %v2359_v56, %v217_v57 }
 0x28b   :  { %v226_v61 = vpack.c.bf16 %v225_v59, %v224_v58  ;;  %v3356_v59 = vld [vmem:[%s3813_s30 + $0x28] sm:$0xff] }
 0x28d   :  { %2652 = vmatmul.mubr.msk.bf16.vlgmr.msra.gmra.mxu1 %vm182_vm2, %v226_v61 }
 0x28e   :  { %2656 = vmatpush3.bf16.msra.mxu1 %v2907_v60  ;;  %2659 = vmatprep.mubr.msk.bf16.mxu1 %vm3052_vm3, %v3051_v42 }
 0x28f   :  { %2657 = vmatprep.subr.bf16.mxu1 %v3051_v42 }
 0x292   :  { %2658 = vmatpush3.bf16.msra.mxu1 %v2908_v62  ;;  %v3363_v62 = vld [vmem:[%s3813_s30 + $0x38] sm:$0xff] }
 0x293   :  { %2663 = vmatprep.subr.bf16.mxu1 %v3051_v42 }
 0x295   :  { %2660 = vmatmul.mubr.msk.bf16.vlgmr.msra.gmra.mxu1 %vm182_vm2, %v226_v61 }
 0x296   :  { %2664 = vmatpush3.bf16.msra.mxu1 %v2909_v63  ;;  %2667 = vmatprep.mubr.msk.bf16.mxu1 %vm3052_vm3, %v3051_v42 }
 0x297   :  { %2665 = vmatprep.subr.bf16.mxu1 %v3051_v42 }
 0x29a   :  { %2666 = vmatpush3.bf16.msra.mxu1 %v2910_v0 }
 0x29b   :  { %2671 = vmatprep.subr.bf16.mxu1 %v3051_v42 }
 0x29d   :  { %2668 = vmatmul.mubr.msk.bf16.vlgmr.msra.gmra.mxu1 %vm182_vm2, %v226_v61 }
 0x29e   :  { %2672 = vmatpush3.bf16.msra.mxu1 %v2911_v1  ;;  %2675 = vmatprep.mubr.msk.bf16.mxu1 %vm3052_vm3, %v3051_v42 }
 0x29f   :  { %2673 = vmatprep.subr.bf16.mxu1 %v3051_v42 }
 0x2a2   :  { %2674 = vmatpush3.bf16.msra.mxu1 %v2912_v2 }
 0x2a5   :  { %2676 = vmatmul.mubr.msk.bf16.vlgmr.msra.gmra.mxu1 %vm182_vm2, %v226_v61 }
 0x34d   :  { %v292_v3 = vpop.f32.mrf.mxu1 }
 0x34f   :  { %v2653_v4 = vpop.f32.mrf.mxu1 }
 0x351   :  { %v295_v5 = vpop.f32.mrf.mxu1 }
 0x352   :  { %v3277_v6 = vpack.c.bf16 %v295_v5, %v292_v3 }
 0x353   :  { %v2654_v7 = vpop.f32.mrf.mxu1 }
 0x354   :  { %2687 = vmatprep.mubr.msk.bf16.mxu0 %vm474_vm4, %v3277_v6 }
 0x355   :  { %v345_v8 = vpop.f32.mrf.mxu1 }
 0x357   :  { %v2661_v9 = vpop.f32.mrf.mxu1 }
 0x359   :  { %v348_v10 = vpop.f32.mrf.mxu1 }
 0x35a   :  { %v3289_v22 = vpack.c.bf16 %v348_v10, %v345_v8 }
 0x35b   :  { %v2662_v11 = vpop.f32.mrf.mxu1 }
 0x35d   :  { %v398_v12 = vpop.f32.mrf.mxu1 }
 0x35f   :  { %v2669_v13 = vpop.f32.mrf.mxu1 }
 0x361   :  { %v401_v14 = vpop.f32.mrf.mxu1 }
 0x362   :  { %v3285_v21 = vpack.c.bf16 %v401_v14, %v398_v12 }
 0x363   :  { %v2670_v15 = vpop.f32.mrf.mxu1 }
 0x365   :  { %v451_v16 = vpop.f32.mrf.mxu1 }
 0x367   :  { %v2677_v17 = vpop.f32.mrf.mxu1 }
 0x369   :  { %v454_v18 = vpop.f32.mrf.mxu1 }
 0x36a   :  { %v3281_v19 = vpack.c.bf16 %v454_v18, %v451_v16 }
 0x36b   :  { %v2678_v20 = vpop.f32.mrf.mxu1 }
 0x36c   :  { %472 = vrot.lane.b32.xlu1 %v3281_v19, %s3053_s28 }
 0x370   :  { %470 = vrot.lane.b32.xlu1 %v3285_v21, %s3053_s28 }
 0x374   :  { %468 = vrot.lane.b32.xlu1 %v3289_v22, %s3053_s28 }
 0x378   :  { %466 = vrot.lane.b32.xlu1 %v3277_v6, %s3053_s28 }
 0x3de   :  { %v473_v23 = vpop.permute.xlu1 %472 }
 0x3df   :  { %v497_v24 = vsel %vm474_vm4, %v473_v23, 0  ;;  %2887 = vmatprep.subr.msk.bf16.mxu0 %vm474_vm4, %v473_v23 }
 0x3e0   :  { %2680 = vmatpush3.bf16.xpose.msra.mxu0 %v497_v24 }
 0x3e2   :  { %v471_v25 = vpop.permute.xlu1 %470 }
 0x3e3   :  { %2888 = vmatprep.subr.msk.bf16.mxu0 %vm474_vm4, %v471_v25  ;;  %v494_v26 = vsel %vm474_vm4, %v471_v25, 0 }
 0x3e6   :  { %v469_v29 = vpop.permute.xlu1 %468 }
 0x3e7   :  { %v491_v30 = vsel %vm474_vm4, %v469_v29, 0 }
 0x3e8   :  { %2682 = vmatpush3.bf16.xpose.msra.mxu0 %v494_v26 }
 0x3e9   :  { %2889 = vmatprep.subr.msk.bf16.mxu0 %vm474_vm4, %v469_v29 }
 0x3ea   :  { %v467_v31 = vpop.permute.xlu1 %466 }
 0x3eb   :  { %v488_v32 = vsel %vm474_vm4, %v467_v31, 0 }
 0x3f0   :  { %2684 = vmatpush3.bf16.xpose.msra.mxu0 %v491_v30 }
 0x3f1   :  { %2890 = vmatprep.subr.msk.bf16.mxu0 %vm474_vm4, %v467_v31 }
 0x3f8   :  { %2686 = vmatpush3.bf16.xpose.msra.mxu0 %v488_v32 }
 0x3f9   :  { %2735 = vmatprep.subr.bf16.mxu0 %v3051_v42 }
 0x3ff   :  { %2688 = vmatmul.mubr.msk.bf16.vlgmr.msra.gmra.mxu0 %vm474_vm4, %v3289_v22 }
 0x400   :  { %2691 = vmatprep.mubr.msk.bf16.mxu0 %vm474_vm4, %v3285_v21 }
 0x407   :  { %2692 = vmatmul.mubr.msk.bf16.gmra.mxu0 %vm474_vm4, %v3281_v19 }
 0x408   :  { %2739 = vmatprep.mubr.msk.bf16.mxu0 %vm3052_vm3, %v3051_v42 }
 0x4bf   :  { %v2689_v33 = vpop.f32.mrf.mxu0 }
 0x4c0   :  { %v542_v40 = vadd.f32 %v2689_v33, %v3320_v35 }
 0x4c1   :  { %v533_v36 = vpop.f32.mrf.mxu0 }
 0x4c2   :  { %v534_v37 = vadd.f32 %v533_v36, %v3315_v34  ;;  %v571_v49 = vsel %vm564_vm5, %v542_v40, -inf }
 0x4c3   :  { %v2690_v38 = vpop.f32.mrf.mxu0 }
 0x4c4   :  { %v565_v41 = vsel %vm564_vm5, %v534_v37, -inf  ;;  %v545_v47 = vadd.f32 %v2690_v38, %v3333_v43 }
 0x4c5   :  { %v536_v44 = vpop.f32.mrf.mxu0  ;;  %566 = vmax.xlane.f32.xlu0 %v565_v41 }
 0x4c6   :  { %v537_v45 = vadd.f32 %v536_v44, %v3326_v39  ;;  %v574_v53 = vsel %vm564_vm5, %v545_v47, -inf }
 0x4c7   :  { %v2693_v46 = vpop.f32.mrf.mxu0 }
 0x4c8   :  { %v568_v48 = vsel %vm564_vm5, %v537_v45, -inf  ;;  %v558_v52 = vadd.f32 %v2693_v46, %v3342_v50 }
 0x4c9   :  { %v549_v51 = vpop.f32.mrf.mxu0  ;;  %569 = vmax.xlane.f32.xlu1 %v568_v48  ;;  %572 = vmax.xlane.f32.xlu0 %v571_v49 }
 0x4ca   :  { %v550_v56 = vadd.f32 %v549_v51, %v3349_v54  ;;  %v583_v57 = vsel %vm564_vm5, %v558_v52, -inf }
 0x4cb   :  { %v2694_v55 = vpop.f32.mrf.mxu0 }
 0x4cc   :  { %v577_v61 = vsel %vm564_vm5, %v550_v56, -inf  ;;  %v561_v63 = vadd.f32 %v2694_v55, %v3363_v62 }
 0x4cd   :  { %575 = vmax.xlane.f32.xlu0 %v574_v53  ;;  %v552_v58 = vpop.f32.mrf.mxu0 }
 0x4ce   :  { %v553_v60 = vadd.f32 %v552_v58, %v3356_v59  ;;  %v586_v1 = vsel %vm564_vm5, %v561_v63, -inf }
 0x4d0   :  { %v580_v0 = vsel %vm564_vm5, %v553_v60, -inf }
 0x4d1   :  { %584 = vmax.xlane.f32.xlu0 %v583_v57 }
 0x4d5   :  { %578 = vmax.xlane.f32.xlu0 %v577_v61 }
 0x4d9   :  { %581 = vmax.xlane.f32.xlu0 %v580_v0 }
 0x4dd   :  { %587 = vmax.xlane.f32.xlu0 %v586_v1 }
 0x4f3   :  { %663 = vrot.lane.b32.xlu0 %v3281_v19, %s3054_s20 }
 0x54e   :  { %v567_v2 = vpop.xlane.xlu0 %566 }
 0x54f   :  { %v589_v3 = vsub.f32 %v534_v37, %v567_v2 }
 0x551   :  { %v597_v9 = vmul.f32 1.442695, %v589_v3 }
 0x552   :  { %v573_v4 = vpop.xlane.xlu0 %572  ;;  %v570_v5 = vpop.xlane.xlu1 %569 }
 0x553   :  { %v591_v7 = vsub.f32 %v542_v40, %v573_v4  ;;  %v590_v10 = vsub.f32 %v537_v45, %v570_v5 }
 0x555   :  { %v601_v8 = vmul.f32 1.442695, %v591_v7  ;;  %v599_v14 = vmul.f32 1.442695, %v590_v10 }
 0x556   :  { %v576_v11 = vpop.xlane.xlu0 %575 }
 0x557   :  { %v592_v12 = vsub.f32 %v545_v47, %v576_v11  ;;  %2947 = vpow2.f32 %v601_v8  ;;  %v750_v11 = vld [vmem:[%s3788_s7] sm:$0xf] }
 0x558   :  { %2949 = vpow2.f32 %v597_v9 }
 0x559   :  { %v603_v13 = vmul.f32 1.442695, %v592_v12 }
 0x55a   :  { %v585_v15 = vpop.xlane.xlu0 %584 }
 0x55b   :  { %2951 = vpow2.f32 %v603_v13  ;;  %v595_v16 = vsub.f32 %v558_v52, %v585_v15 }
 0x55c   :  { %2953 = vpow2.f32 %v599_v14 }
 0x55d   :  { %v609_v17 = vmul.f32 1.442695, %v595_v16 }
 0x55e   :  { %v579_v18 = vpop.xlane.xlu0 %578 }
 0x55f   :  { %2955 = vpow2.f32 %v609_v17  ;;  %v593_v19 = vsub.f32 %v550_v56, %v579_v18  ;;  %v759_v17 = vsel %vm757_vm6, %v750_v11, 0 }
 0x561   :  { %v605_v20 = vmul.f32 1.442695, %v593_v19 }
 0x562   :  { %v582_v23 = vpop.xlane.xlu0 %581 }
 0x563   :  { %2957 = vpow2.f32 %v605_v20  ;;  %v594_v25 = vsub.f32 %v553_v60, %v582_v23 }
 0x564   :  { %v3370_v24 = vpop.eup %2947 }
 0x565   :  { %v619_v26 = vsel %vm564_vm5, %v3370_v24, 0.0  ;;  %v2950_v30 = vpop.eup %2949  ;;  %v607_v33 = vmul.f32 1.442695, %v594_v25 }
 0x566   :  { %v588_v29 = vpop.xlane.xlu0 %587  ;;  %620 = vadd.xlane.f32.xlu0 %v619_v26  ;;  %v613_v38 = vsel %vm564_vm5, %v2950_v30, 0.0 }
 0x567   :  { %v596_v31 = vsub.f32 %v561_v63, %v588_v29 }
 0x568   :  { %v2952_v32 = vpop.eup %2951 }
 0x569   :  { %v611_v36 = vmul.f32 1.442695, %v596_v31  ;;  %v622_v37 = vsel %vm564_vm5, %v2952_v32, 0.0  ;;  %v2954_v41 = vpop.eup %2953  ;;  %v751_v31 = vld [vmem:[%s3788_s7 + $0x4] sm:$0xf] }
 0x56a   :  { %623 = vadd.xlane.f32.xlu1 %v622_v37  ;;  %v664_v40 = vpop.permute.xlu0 %663  ;;  %614 = vadd.xlane.f32.xlu0 %v613_v38  ;;  %v616_v46 = vsel %vm564_vm5, %v2954_v41, 0.0 }
 0x56b   :  { %2959 = vpow2.f32 %v611_v36  ;;  %2695 = vmatprep.subr.bf16.mxu1 %v664_v40  ;;  %v806_v36 = vsel %vm757_vm6, %v751_v31, 0 }
 0x56c   :  { %v3376_v44 = vpop.eup %2955  ;;  %2696 = vmatpush3.bf16.msra.mxu1 %v664_v40  ;;  %2961 = vpow2.f32 %v607_v33  ;;  %v752_v40 = vld [vmem:[%s3788_s7 + $0x8] sm:$0xf] }
 0x56d   :  { %v631_v45 = vsel %vm564_vm5, %v3376_v44, 0.0 }
 0x56e   :  { %632 = vadd.xlane.f32.xlu1 %v631_v45  ;;  %617 = vadd.xlane.f32.xlu0 %v616_v46 }
 0x570   :  { %v2958_v47 = vpop.eup %2957 }
 0x571   :  { %v625_v48 = vsel %vm564_vm5, %v2958_v47, 0.0 }
 0x572   :  { %626 = vadd.xlane.f32.xlu1 %v625_v48 }
 0x578   :  { %v2960_v49 = vpop.eup %2959 }
 0x579   :  { %v634_v51 = vsel %vm564_vm5, %v2960_v49, 0.0  ;;  %v2962_v52 = vpop.eup %2961 }
 0x57a   :  { %635 = vadd.xlane.f32.xlu1 %v634_v51  ;;  %v628_v53 = vsel %vm564_vm5, %v2962_v52, 0.0 }
 0x57e   :  { %629 = vadd.xlane.f32.xlu1 %v628_v53 }
 0x584   :  { %659 = vrot.lane.b32.xlu0 %v3289_v22, %s3054_s20 }
 0x588   :  { %657 = vrot.lane.b32.xlu0 %v3277_v6, %s3054_s20 }
 0x58f   :  { %661 = vrot.lane.b32.xlu1 %v3285_v21, %s3054_s20 }
 0x5ef   :  { %v621_v55 = vpop.xlane.xlu0 %620 }
 0x5f3   :  { %v624_v56 = vpop.xlane.xlu1 %623  ;;  %v615_v57 = vpop.xlane.xlu0 %614 }
 0x5f4   :  { %2963 = vrcp.f32 %v615_v57 }
 0x5f7   :  { %v618_v58 = vpop.xlane.xlu0 %617  ;;  %v633_v60 = vpop.xlane.xlu1 %632 }
 0x5f8   :  { %2965 = vrcp.f32 %v618_v58 }
 0x5f9   :  { %2967 = vrcp.f32 %v624_v56 }
 0x5fa   :  { %2969 = vrcp.f32 %v621_v55 }
 0x5fb   :  { %v627_v61 = vpop.xlane.xlu1 %626  ;;  %v660_v21 = vpop.permute.xlu0 %659 }
 0x5fc   :  { %2971 = vrcp.f32 %v627_v61 }
 0x5ff   :  { %v658_v8 = vpop.permute.xlu0 %657 }
 0x601   :  { %v2964_v0 = vpop.eup %2963 }
 0x602   :  { %v645_v2 = vmul.f32 %v2964_v0, %v2950_v30 }
 0x603   :  { %v636_v63 = vpop.xlane.xlu1 %635 }
 0x605   :  { %v2966_v1 = vpop.eup %2965 }
 0x606   :  { %v646_v6 = vmul.f32 %v2966_v1, %v2954_v41  ;;  %v2968_v5 = vpop.eup %2967 }
 0x607   :  { %v630_v22 = vpop.xlane.xlu1 %629  ;;  %v2970_v7 = vpop.eup %2969  ;;  %v648_v9 = vmul.f32 %v2968_v5, %v2952_v32 }
 0x608   :  { %2973 = vrcp.f32 %v630_v22  ;;  %v653_v3 = vpack.c.bf16 %v646_v6, %v645_v2  ;;  %v647_v12 = vmul.f32 %v2970_v7, %v3370_v24 }
 0x609   :  { %2975 = vrcp.f32 %v636_v63  ;;  %v2972_v10 = vpop.eup %2971 }
 0x60a   :  { %2703 = vmatprep.mubr.msk.bf16.mxu1 %vm564_vm5, %v653_v3  ;;  %2977 = vrcp.f32 %v633_v60  ;;  %v654_v14 = vpack.c.bf16 %v648_v9, %v647_v12  ;;  %v649_v15 = vmul.f32 %v2972_v10, %v2958_v47  ;;  %v753_v47 = vld [vmem:[%s3788_s7 + $0xc] sm:$0xf] }
 0x60b   :  { %v662_v4 = vpop.permute.xlu1 %661 }
 0x60c   :  { %2697 = vmatprep.subr.bf16.mxu1 %v662_v4 }
 0x60d   :  { %2698 = vmatpush3.bf16.msra.mxu1 %v662_v4 }
 0x60e   :  { %2699 = vmatprep.subr.bf16.mxu1 %v660_v21 }
 0x611   :  { %2700 = vmatpush3.bf16.msra.mxu1 %v660_v21 }
 0x612   :  { %2701 = vmatprep.subr.bf16.mxu1 %v658_v8 }
 0x615   :  { %v2974_v13 = vpop.eup %2973  ;;  %2702 = vmatpush3.bf16.msra.mxu1 %v658_v8 }
 0x616   :  { %v650_v16 = vmul.f32 %v2974_v13, %v2962_v52  ;;  %2711 = vmatprep.subr.bf16.mxu1 %v3051_v42  ;;  %v2976_v18 = vpop.eup %2975 }
 0x617   :  { %v2978_v20 = vpop.eup %2977  ;;  %v652_v23 = vmul.f32 %v2976_v18, %v2960_v49  ;;  %v900_v49 = vsel %vm757_vm6, %v753_v47, 0  ;;  %v2917_v47 = vld [vmem:[%s3794_s13 + $0x28] sm:$0xff]  }
 0x618   :  { %2704 = vmatmul.mubr.msk.bf16.vlgmr.msra.gmra.mxu1 %vm564_vm5, %v654_v14  ;;  %v655_v19 = vpack.c.bf16 %v650_v16, %v649_v15  ;;  %v651_v24 = vmul.f32 %v2978_v20, %v3376_v44  ;;  %v853_v44 = vsel %vm757_vm6, %v752_v40, 0  ;;  %v2384_v14 = vld [vmem:[%s3789_s8] ss:$0 sm:$0xff] }
 0x619   :  { %2712 = vmatpush3.bf16.msra.mxu1 %v759_v17 }
 0x61a   :  { %2707 = vmatprep.mubr.msk.bf16.mxu1 %vm564_vm5, %v655_v19  ;;  %2717 = vmatprep.subr.bf16.mxu1 %v3051_v42  ;;  %v656_v25 = vpack.c.bf16 %v652_v23, %v651_v24 }
 0x620   :  { %2708 = vmatmul.mubr.msk.bf16.gmra.mxu1 %vm564_vm5, %v656_v25 }
 0x621   :  { %2713 = vmatprep.mubr.msk.bf16.mxu1 %vm3052_vm3, %v3051_v42 }
 0x6d8   :  { %v2705_v26 = vpop.f32.mrf.mxu1 }
 0x6da   :  { %v715_v29 = vpop.f32.mrf.mxu1 }
 0x6dc   :  { %v2706_v30 = vpop.f32.mrf.mxu1 }
 0x6dd   :  { %v747_v41 = vpack.c.bf16 %v2706_v30, %v2705_v26 }
 0x6de   :  { %v718_v32 = vpop.f32.mrf.mxu1 }
 0x6df   :  { %v746_v33 = vpack.c.bf16 %v718_v32, %v715_v29 }
 0x6e0   :  { %v2709_v37 = vpop.f32.mrf.mxu1 }
 0x6e1   :  { %2714 = vmatmul.mubr.msk.bf16.vlgmr.msra.gmra.mxu1 %vm474_vm4, %v746_v33 }
 0x6e2   :  { %2718 = vmatpush3.bf16.msra.mxu1 %v806_v36  ;;  %2719 = vmatprep.mubr.msk.bf16.mxu1 %vm3052_vm3, %v3051_v42  ;;  %v731_v38 = vpop.f32.mrf.mxu1 }
 0x6e3   :  { %2723 = vmatprep.subr.bf16.mxu1 %v3051_v42 }
 0x6e4   :  { %v2710_v45 = vpop.f32.mrf.mxu1 }
 0x6e5   :  { %v749_v51 = vpack.c.bf16 %v2710_v45, %v2709_v37  ;;  %v2915_v45 = vld [vmem:[%s3794_s13 + $0x38] sm:$0xff]  }
 0x6e6   :  { %v734_v46 = vpop.f32.mrf.mxu1 }
 0x6e7   :  { %v748_v48 = vpack.c.bf16 %v734_v46, %v731_v38  ;;  %v2916_v46 = vld [vmem:[%s3794_s13 + $0x30] sm:$0xff]  }
 0x6e9   :  { %2720 = vmatmul.mubr.msk.bf16.vlgmr.msra.gmra.mxu1 %vm474_vm4, %v747_v41  ;;  %v2913_v41 = vld [vmem:[%s3792_s11 + $0x8] sm:$0xff]  }
 0x6ea   :  { %2724 = vmatpush3.bf16.msra.mxu1 %v853_v44  ;;  %2725 = vmatprep.mubr.msk.bf16.mxu1 %vm3052_vm3, %v3051_v42  ;;  %v2914_v44 = vld [vmem:[%s3792_s11] sm:$0xff]  }
 0x6eb   :  { %2729 = vmatprep.subr.bf16.mxu1 %v3051_v42  ;;  %2736 = vmatpush3.bf16.msra.mxu0 %v2913_v41 }
 0x6ec   :  { %2737 = vmatprep.subr.bf16.mxu0 %v3051_v42 }
 0x6ef   :  { %2738 = vmatpush3.bf16.msra.mxu0 %v2914_v44 }
 0x6f0   :  { %2763 = vmatprep.subr.bf16.mxu0 %v3051_v42 }
 0x6f1   :  { %2726 = vmatmul.mubr.msk.bf16.vlgmr.msra.gmra.mxu1 %vm474_vm4, %v748_v48  ;;  %v2918_v48 = vld [vmem:[%s3794_s13 + $0x20] sm:$0xff]  }
 0x6f2   :  { %2730 = vmatpush3.bf16.msra.mxu1 %v900_v49  ;;  %2731 = vmatprep.mubr.msk.bf16.mxu1 %vm3052_vm3, %v3051_v42  ;;  %v2919_v49 = vld [vmem:[%s3794_s13 + $0x18] sm:$0xff]  }
 0x6f3   :  { %2743 = vmatprep.subr.bf16.mxu1 %v3051_v42 }
 0x6f9   :  { %2732 = vmatmul.mubr.msk.bf16.vlgmr.msra.gmra.mxu1 %vm474_vm4, %v749_v51 }
 0x6fa   :  { %2759 = vmatprep.mubr.msk.bf16.mxu1 %vm3052_vm3, %v3051_v42  ;;  %2744 = vmatpush3.bf16.msra.mxu1 %v2915_v45 }
 0x6fb   :  { %2745 = vmatprep.subr.bf16.mxu1 %v3051_v42 }
 0x6fe   :  { %2746 = vmatpush3.bf16.msra.mxu1 %v2916_v46  ;;  %v2923_v46 = vld [vmem:[%s3787_s6 + $0x48] sm:$0xff]  }
 0x6ff   :  { %2747 = vmatprep.subr.bf16.mxu1 %v3051_v42 }
 0x702   :  { %2748 = vmatpush3.bf16.msra.mxu1 %v2917_v47  ;;  %v2924_v47 = vld [vmem:[%s3787_s6 + $0x40] sm:$0xff]  }
 0x703   :  { %2749 = vmatprep.subr.bf16.mxu1 %v3051_v42 }
 0x706   :  { %2750 = vmatpush3.bf16.msra.mxu1 %v2918_v48 }
 0x707   :  { %2751 = vmatprep.subr.bf16.mxu1 %v3051_v42 }
 0x70a   :  { %2752 = vmatpush3.bf16.msra.mxu1 %v2919_v49 }
 0x70b   :  { %2753 = vmatprep.subr.bf16.mxu1 %v3051_v42 }
 0x7a1   :  { %v795_v52 = vpop.f32.mrf.mxu1 }
 0x7a2   :  { %v943_v2 = vsel %vm182_vm2, %v795_v52, 0.0 }
 0x7a3   :  { %v2715_v53 = vpop.f32.mrf.mxu1 }
 0x7a5   :  { %v798_v55 = vpop.f32.mrf.mxu1 }
 0x7a6   :  { %v950_v8 = vsel %vm182_vm2, %v798_v55, 0.0 }
 0x7a7   :  { %v2716_v56 = vpop.f32.mrf.mxu1 }
 0x7a9   :  { %v842_v57 = vpop.f32.mrf.mxu1 }
 0x7aa   :  { %v944_v1 = vsel %vm182_vm2, %v842_v57, 0.0 }
 0x7ab   :  { %v2721_v58 = vpop.f32.mrf.mxu1  ;;  %v945_v3 = vadd.f32 %v944_v1, %v943_v2 }
 0x7ad   :  { %v845_v60 = vpop.f32.mrf.mxu1 }
 0x7ae   :  { %v951_v4 = vsel %vm182_vm2, %v845_v60, 0.0 }
 0x7af   :  { %v2722_v61 = vpop.f32.mrf.mxu1  ;;  %v952_v11 = vadd.f32 %v951_v4, %v950_v8  ;;  %v2920_v4 = vld [vmem:[%s3794_s13 + $0x10] sm:$0xff]   ;;  %v2387_v8 = vld [vmem:[%s3793_s12] ss:$0 sm:$0xff] }
 0x7b0   :  { %v2385_v61 = vld [vmem:[%s3790_s9] ss:$0 sm:$0xff]  ;;  %2754 = vmatpush3.bf16.msra.mxu1 %v2920_v4  ;;  %v2927_v4 = vld [vmem:[%s3787_s6 + $0x68] sm:$0xff]  }
 0x7b1   :  { %v889_v63 = vpop.f32.mrf.mxu1  ;;  %2755 = vmatprep.subr.bf16.mxu1 %v3051_v42 }
 0x7b2   :  { %v946_v6 = vsel %vm182_vm2, %v889_v63, 0.0 }
 0x7b3   :  { %v2727_v0 = vpop.f32.mrf.mxu1  ;;  %v947_v5 = vadd.f32 %v946_v6, %v945_v3 }
 0x7b5   :  { %v892_v22 = vpop.f32.mrf.mxu1 }
 0x7b6   :  { %v953_v9 = vsel %vm182_vm2, %v892_v22, 0.0  ;;  %v2386_v22 = vld [vmem:[%s3791_s10] ss:$0 sm:$0xff] }
 0x7b7   :  { %v2728_v21 = vpop.f32.mrf.mxu1  ;;  %v954_v15 = vadd.f32 %v953_v9, %v952_v11 }
 0x7b9   :  { %v936_v7 = vpop.f32.mrf.mxu1 }
 0x7ba   :  { %v948_v10 = vsel %vm182_vm2, %v936_v7, 0.0  ;;  %v2922_v7 = vld [vmem:[%s3794_s13] sm:$0xff]  }
 0x7bb   :  { %v949_v12 = vadd.f32 %v948_v10, %v947_v5  ;;  %v2733_v13 = vpop.f32.mrf.mxu1  ;;  %v2921_v5 = vld [vmem:[%s3794_s13 + $0x8] sm:$0xff]  }
 0x7bc   :  { %2756 = vmatpush3.bf16.msra.mxu1 %v2921_v5  ;;  %v2928_v5 = vld [vmem:[%s3787_s6 + $0x60] sm:$0xff]  }
 0x7bd   :  { %v957_v16 = vadd.f32 %v949_v12, %v3215_v27  ;;  %v939_v17 = vpop.f32.mrf.mxu1  ;;  %2757 = vmatprep.subr.bf16.mxu1 %v3051_v42 }
 0x7be   :  { %v955_v18 = vsel %vm182_vm2, %v939_v17, 0.0 }
 0x7bf   :  { %v956_v19 = vadd.f32 %v955_v18, %v954_v15  ;;  %v2734_v20 = vpop.f32.mrf.mxu1  ;;  %v3443_v23 = vadd.f32 %v2384_v14, %v957_v16 }
 0x7c0   :  { %2758 = vmatpush3.bf16.msra.mxu1 %v2922_v7  ;;  %v2929_v7 = vld [vmem:[%s3787_s6 + $0x78] sm:$0xff]  }
 0x7c1   :  { %v958_v24 = vadd.f32 %v956_v19, %v3217_v28  ;;  %v970_v25 = vsel %vm182_vm2, %v3443_v23, 0.0  ;;  %v2399_v19 = vld [vmem:[%s3814_s26] ss:$0 sm:$0xff] }
 0x7c2   :  { %971 = vadd.xlane.f32.xlu0 %v970_v25 }
 0x7c3   :  { %v3448_v26 = vadd.f32 %v2384_v14, %v958_v24 }
 0x7c5   :  { %v973_v29 = vsel %vm182_vm2, %v3448_v26, 0.0 }
 0x7c6   :  { %974 = vadd.xlane.f32.xlu1 %v973_v29 }
 0x84b   :  { %v972_v27 = vpop.xlane.xlu0 %971 }
 0x84c   :  { %v976_v30 = vmul.f32 0.03125, %v972_v27 }
 0x84e   :  { %v978_v31 = vsub.f32 %v3443_v23, %v976_v30 }
 0x84f   :  { %v975_v32 = vpop.xlane.xlu1 %974 }
 0x850   :  { %v977_v33 = vmul.f32 0.03125, %v975_v32  ;;  %v980_v36 = vmul.f32 %v978_v31, %v978_v31 }
 0x852   :  { %v979_v37 = vsub.f32 %v3448_v26, %v977_v33  ;;  %v982_v28 = vsel %vm182_vm2, %v980_v36, 0.0 }
 0x853   :  { %983 = vadd.xlane.f32.xlu0 %v982_v28 }
 0x854   :  { %v981_v38 = vmul.f32 %v979_v37, %v979_v37 }
 0x856   :  { %v985_v40 = vsel %vm182_vm2, %v981_v38, 0.0 }
 0x857   :  { %986 = vadd.xlane.f32.xlu0 %v985_v40 }
 0x8dc   :  { %v984_v51 = vpop.xlane.xlu0 %983 }
 0x8dd   :  { %v988_v52 = vmul.f32 0.03125, %v984_v51 }
 0x8df   :  { %v990_v53 = vadd.f32 1e-05, %v988_v52 }
 0x8e0   :  { %v987_v55 = vpop.xlane.xlu0 %986 }
 0x8e1   :  { %2979 = vrsqrt.f32 %v990_v53  ;;  %v989_v56 = vmul.f32 0.03125, %v987_v55 }
 0x8e3   :  { %v991_v57 = vadd.f32 1e-05, %v989_v56 }
 0x8e5   :  { %2981 = vrsqrt.f32 %v991_v57 }
 0x8ee   :  { %v2980_v58 = vpop.eup %2979 }
 0x8ef   :  { %v994_v60 = vmul.f32 %v2980_v58, %v978_v31  ;;  %v2402_v58 = vld [vmem:[%s3785_s4 + $0x1] ss:$0 sm:$0xff] }
 0x8f1   :  { %v1002_v0 = vmul.f32 %v2385_v61, %v994_v60 }
 0x8f2   :  { %v2982_v63 = vpop.eup %2981 }
 0x8f3   :  { %v995_v1 = vmul.f32 %v2982_v63, %v979_v37  ;;  %v1010_v6 = vadd.f32 %v2386_v22, %v1002_v0  ;;  %v2403_v0 = vld [vmem:[%s3786_s5 + $0x1] ss:$0 sm:$0xff] }
 0x8f5   :  { %v1003_v2 = vmul.f32 %v2385_v61, %v995_v1 }
 0x8f7   :  { %v1011_v3 = vadd.f32 %v2386_v22, %v1003_v2 }
 0x8f9   :  { %v1012_v21 = vpack.c.bf16 %v1011_v3, %v1010_v6  ;;  %v2925_v6 = vld [vmem:[%s3787_s6 + $0x58] sm:$0xff]  }
 0x8fb   :  { %2740 = vmatmul.mubr.msk.bf16.vlgmr.msra.gmra.mxu0 %vm182_vm2, %v1012_v21  ;;  %v2926_v21 = vld [vmem:[%s3787_s6 + $0x50] sm:$0xff]  }
 0x8fc   :  { %2767 = vmatprep.mubr.msk.bf16.mxu0 %vm3052_vm3, %v3051_v42  ;;  %2764 = vmatpush3.bf16.msra.mxu0 %v2923_v46 }
 0x8fd   :  { %2765 = vmatprep.subr.bf16.mxu0 %v3051_v42 }
 0x900   :  { %2766 = vmatpush3.bf16.msra.mxu0 %v2924_v47 }
 0x901   :  { %2771 = vmatprep.subr.bf16.mxu0 %v3051_v42 }
 0x9bb   :  { %v1073_v9 = vpop.f32.mrf.mxu0 }
 0x9bc   :  { %v1074_v11 = vadd.f32 %v2387_v8, %v1073_v9 }
 0x9bd   :  { %v2741_v10 = vpop.f32.mrf.mxu0 }
 0x9be   :  { %v1080_v15 = vmax.f32 %v1074_v11, 0.0 }
 0x9bf   :  { %v1076_v12 = vpop.f32.mrf.mxu0 }
 0x9c0   :  { %v1077_v13 = vadd.f32 %v2387_v8, %v1076_v12  ;;  %v2930_v8 = vld [vmem:[%s3787_s6 + $0x70] sm:$0xff]  }
 0x9c1   :  { %v2742_v14 = vpop.f32.mrf.mxu0 }
 0x9c2   :  { %v1081_v16 = vmax.f32 %v1077_v13, 0.0 }
 0x9c4   :  { %v1082_v17 = vpack.c.bf16 %v1081_v16, %v1080_v15 }
 0x9c6   :  { %2760 = vmatmul.mubr.bf16.vlgmr.msra.gmra.mxu1 %v1082_v17 }
 0xa86   :  { %v1181_v18 = vpop.f32.mrf.mxu1 }
 0xa87   :  { %v1188_v20 = vadd.f32 %v1181_v18, %v3443_v23 }
 0xa88   :  { %v2761_v24 = vpop.f32.mrf.mxu1 }
 0xa89   :  { %v3511_v25 = vadd.f32 %v2399_v19, %v1188_v20 }
 0xa8a   :  { %v1184_v29 = vpop.f32.mrf.mxu1 }
 0xa8b   :  { %v1189_v27 = vadd.f32 %v1184_v29, %v3448_v26  ;;  %v1203_v30 = vsel %vm182_vm2, %v3511_v25, 0.0 }
 0xa8c   :  { %1204 = vadd.xlane.f32.xlu0 %v1203_v30  ;;  %v2762_v31 = vpop.f32.mrf.mxu1 }
 0xa8d   :  { %v3516_v32 = vadd.f32 %v2399_v19, %v1189_v27 }
 0xa8f   :  { %v1206_v33 = vsel %vm182_vm2, %v3516_v32, 0.0 }
 0xa90   :  { %1207 = vadd.xlane.f32.xlu1 %v1206_v33 }
 0xb15   :  { %v1205_v36 = vpop.xlane.xlu0 %1204 }
 0xb16   :  { %v1209_v37 = vmul.f32 0.03125, %v1205_v36 }
 0xb18   :  { %v1211_v23 = vsub.f32 %v3511_v25, %v1209_v37 }
 0xb19   :  { %v1208_v28 = vpop.xlane.xlu1 %1207 }
 0xb1a   :  { %v1210_v38 = vmul.f32 0.03125, %v1208_v28  ;;  %v1213_v40 = vmul.f32 %v1211_v23, %v1211_v23 }
 0xb1c   :  { %v1212_v26 = vsub.f32 %v3516_v32, %v1210_v38  ;;  %v1215_v41 = vsel %vm182_vm2, %v1213_v40, 0.0 }
 0xb1d   :  { %1216 = vadd.xlane.f32.xlu0 %v1215_v41 }
 0xb1e   :  { %v1214_v44 = vmul.f32 %v1212_v26, %v1212_v26 }
 0xb20   :  { %v1218_v45 = vsel %vm182_vm2, %v1214_v44, 0.0 }
 0xb21   :  { %1219 = vadd.xlane.f32.xlu1 %v1218_v45 }
 0xba6   :  { %v1217_v48 = vpop.xlane.xlu0 %1216 }
 0xba7   :  { %v1221_v49 = vmul.f32 0.03125, %v1217_v48 }
 0xba9   :  { %v1223_v51 = vadd.f32 1e-05, %v1221_v49 }
 0xbaa   :  { %v1220_v52 = vpop.xlane.xlu1 %1219 }
 0xbab   :  { %2983 = vrsqrt.f32 %v1223_v51  ;;  %v1222_v53 = vmul.f32 0.03125, %v1220_v52 }
 0xbad   :  { %v1224_v55 = vadd.f32 1e-05, %v1222_v53 }
 0xbaf   :  { %2985 = vrsqrt.f32 %v1224_v55 }
 0xbb8   :  { %v2984_v56 = vpop.eup %2983 }
 0xbb9   :  { %v1227_v57 = vmul.f32 %v2984_v56, %v1211_v23 }
 0xbbb   :  { %v1235_v63 = vmul.f32 %v2402_v58, %v1227_v57 }
 0xbbc   :  { %v2986_v60 = vpop.eup %2985 }
 0xbbd   :  { %v1228_v61 = vmul.f32 %v2986_v60, %v1212_v26  ;;  %v1243_v22 = vadd.f32 %v2403_v0, %v1235_v63 }
 0xbbf   :  { %v1236_v1 = vmul.f32 %v2402_v58, %v1228_v61 }
 0xbc1   :  { %v1244_v2 = vadd.f32 %v2403_v0, %v1236_v1 }
 0xbc3   :  { %v1245_v3 = vpack.c.bf16 %v1244_v2, %v1243_v22 }
 0xbc5   :  { %2768 = vmatmul.mubr.msk.bf16.vlgmr.msra.gmra.mxu0 %vm182_vm2, %v1245_v3 }
 0xbc6   :  { %2772 = vmatpush3.bf16.msra.mxu0 %v2925_v6  ;;  %2775 = vmatprep.mubr.msk.bf16.mxu0 %vm3052_vm3, %v3051_v42 }
 0xbc7   :  { %2773 = vmatprep.subr.bf16.mxu0 %v3051_v42 }
 0xbca   :  { %2774 = vmatpush3.bf16.msra.mxu0 %v2926_v21 }
 0xbcb   :  { %2779 = vmatprep.subr.bf16.mxu0 %v3051_v42 }
 0xbcd   :  { %2776 = vmatmul.mubr.msk.bf16.vlgmr.msra.gmra.mxu0 %vm182_vm2, %v1245_v3 }
 0xbce   :  { %2780 = vmatpush3.bf16.msra.mxu0 %v2927_v4  ;;  %2783 = vmatprep.mubr.msk.bf16.mxu0 %vm3052_vm3, %v3051_v42 }
 0xbcf   :  { %2781 = vmatprep.subr.bf16.mxu0 %v3051_v42 }
 0xbd2   :  { %2782 = vmatpush3.bf16.msra.mxu0 %v2928_v5 }
 0xbd3   :  { %2787 = vmatprep.subr.bf16.mxu0 %v3051_v42 }
 0xbd5   :  { %2784 = vmatmul.mubr.msk.bf16.vlgmr.msra.gmra.mxu0 %vm182_vm2, %v1245_v3 }
 0xbd6   :  { %2788 = vmatpush3.bf16.msra.mxu0 %v2929_v7  ;;  %2791 = vmatprep.mubr.msk.bf16.mxu0 %vm3052_vm3, %v3051_v42 }
 0xbd7   :  { %2789 = vmatprep.subr.bf16.mxu0 %v3051_v42 }
 0xbda   :  { %2790 = vmatpush3.bf16.msra.mxu0 %v2930_v8 }
 0xbdd   :  { %2792 = vmatmul.mubr.msk.bf16.vlgmr.msra.gmra.mxu0 %vm182_vm2, %v1245_v3 }
 0xc85   :  { %v1312_v9 = vpop.f32.mrf.mxu0 }
 0xc87   :  { %v2769_v10 = vpop.f32.mrf.mxu0 }
 0xc89   :  { %v1315_v11 = vpop.f32.mrf.mxu0 }
 0xc8a   :  { %v3571_v12 = vpack.c.bf16 %v1315_v11, %v1312_v9 }
 0xc8b   :  { %v2770_v13 = vpop.f32.mrf.mxu0 }
 0xc8c   :  { %2803 = vmatprep.mubr.msk.bf16.mxu1 %vm474_vm4, %v3571_v12 }
 0xc8d   :  { %v1365_v14 = vpop.f32.mrf.mxu0 }
 0xc8f   :  { %v2777_v15 = vpop.f32.mrf.mxu0 }
 0xc91   :  { %v1368_v16 = vpop.f32.mrf.mxu0 }
 0xc92   :  { %v3579_v30 = vpack.c.bf16 %v1368_v16, %v1365_v14 }
 0xc93   :  { %v2778_v17 = vpop.f32.mrf.mxu0 }
 0xc95   :  { %v1418_v18 = vpop.f32.mrf.mxu0 }
 0xc97   :  { %v2785_v19 = vpop.f32.mrf.mxu0 }
 0xc99   :  { %v1421_v20 = vpop.f32.mrf.mxu0 }
 0xc9a   :  { %v3575_v24 = vpack.c.bf16 %v1421_v20, %v1418_v18 }
 0xc9b   :  { %v2786_v29 = vpop.f32.mrf.mxu0 }
 0xc9c   :  { %1490 = vrot.lane.b32.xlu1 %v3575_v24, %s3053_s28 }
 0xc9d   :  { %v1471_v27 = vpop.f32.mrf.mxu0 }
 0xc9f   :  { %v2793_v31 = vpop.f32.mrf.mxu0 }
 0xca0   :  { %1488 = vrot.lane.b32.xlu1 %v3579_v30, %s3053_s28 }
 0xca1   :  { %v1474_v33 = vpop.f32.mrf.mxu0 }
 0xca2   :  { %v1481_v36 = vpack.c.bf16 %v1474_v33, %v1471_v27 }
 0xca3   :  { %v2794_v37 = vpop.f32.mrf.mxu0 }
 0xca4   :  { %1492 = vrot.lane.b32.xlu0 %v1481_v36, %s3053_s28 }
 0xca8   :  { %1486 = vrot.lane.b32.xlu0 %v3571_v12, %s3053_s28 }
 0xd0e   :  { %v1491_v38 = vpop.permute.xlu1 %1490 }
 0xd0f   :  { %v1513_v40 = vsel %vm474_vm4, %v1491_v38, 0 }
 0xd12   :  { %v1489_v26 = vpop.permute.xlu1 %1488 }
 0xd13   :  { %v1510_v41 = vsel %vm474_vm4, %v1489_v26, 0 }
 0xd16   :  { %v1493_v23 = vpop.permute.xlu0 %1492 }
 0xd17   :  { %v1516_v28 = vsel %vm474_vm4, %v1493_v23, 0  ;;  %2891 = vmatprep.subr.msk.bf16.mxu1 %vm474_vm4, %v1493_v23 }
 0xd18   :  { %2796 = vmatpush3.bf16.xpose.msra.mxu1 %v1516_v28 }
 0xd19   :  { %2892 = vmatprep.subr.msk.bf16.mxu1 %vm474_vm4, %v1491_v38 }
 0xd1a   :  { %v1487_v44 = vpop.permute.xlu0 %1486 }
 0xd1b   :  { %v1507_v45 = vsel %vm474_vm4, %v1487_v44, 0 }
 0xd20   :  { %2798 = vmatpush3.bf16.xpose.msra.mxu1 %v1513_v40 }
 0xd21   :  { %2893 = vmatprep.subr.msk.bf16.mxu1 %vm474_vm4, %v1489_v26 }
 0xd28   :  { %2800 = vmatpush3.bf16.xpose.msra.mxu1 %v1510_v41 }
 0xd29   :  { %2894 = vmatprep.subr.msk.bf16.mxu1 %vm474_vm4, %v1487_v44 }
 0xd30   :  { %2802 = vmatpush3.bf16.xpose.msra.mxu1 %v1507_v45 }
 0xd31   :  { %2839 = vmatprep.subr.bf16.mxu1 %v3051_v42 }
 0xd37   :  { %2804 = vmatmul.mubr.msk.bf16.vlgmr.msra.gmra.mxu1 %vm474_vm4, %v3579_v30 }
 0xd38   :  { %2807 = vmatprep.mubr.msk.bf16.mxu1 %vm474_vm4, %v3575_v24 }
 0xd3f   :  { %2808 = vmatmul.mubr.msk.bf16.gmra.mxu1 %vm474_vm4, %v1481_v36 }
 0xd40   :  { %2841 = vmatprep.mubr.msk.bf16.mxu1 %vm3052_vm3, %v3051_v42 }
 0xdf7   :  { %v2805_v46 = vpop.f32.mrf.mxu1 }
 0xdf8   :  { %v1561_v57 = vadd.f32 %v2805_v46, %v3320_v35 }
 0xdf9   :  { %v1552_v47 = vpop.f32.mrf.mxu1 }
 0xdfa   :  { %v1553_v48 = vadd.f32 %v1552_v47, %v3315_v34  ;;  %v1589_v0 = vsel %vm564_vm5, %v1561_v57, -inf }
 0xdfb   :  { %v2806_v49 = vpop.f32.mrf.mxu1 }
 0xdfc   :  { %v1564_v51 = vadd.f32 %v2806_v49, %v3333_v43  ;;  %v1583_v52 = vsel %vm564_vm5, %v1553_v48, -inf }
 0xdfd   :  { %v1555_v53 = vpop.f32.mrf.mxu1  ;;  %1584 = vmax.xlane.f32.xlu1 %v1583_v52 }
 0xdfe   :  { %v1556_v55 = vadd.f32 %v1555_v53, %v3326_v39  ;;  %v1592_v60 = vsel %vm564_vm5, %v1564_v51, -inf }
 0xdff   :  { %v2809_v56 = vpop.f32.mrf.mxu1 }
 0xe00   :  { %v1586_v58 = vsel %vm564_vm5, %v1556_v55, -inf  ;;  %v1577_v22 = vadd.f32 %v2809_v56, %v3342_v50 }
 0xe01   :  { %v1568_v61 = vpop.f32.mrf.mxu1  ;;  %1587 = vmax.xlane.f32.xlu0 %v1586_v58  ;;  %1593 = vmax.xlane.f32.xlu1 %v1592_v60 }
 0xe02   :  { %v1569_v63 = vadd.f32 %v1568_v61, %v3349_v54  ;;  %v1601_v54 = vsel %vm564_vm5, %v1577_v22, -inf }
 0xe03   :  { %v2810_v34 = vpop.f32.mrf.mxu1 }
 0xe04   :  { %v1580_v43 = vadd.f32 %v2810_v34, %v3363_v62  ;;  %v1595_v2 = vsel %vm564_vm5, %v1569_v63, -inf }
 0xe05   :  { %v1571_v1 = vpop.f32.mrf.mxu1  ;;  %1590 = vmax.xlane.f32.xlu0 %v1589_v0 }
 0xe06   :  { %v1572_v39 = vadd.f32 %v1571_v1, %v3356_v59  ;;  %v1604_v35 = vsel %vm564_vm5, %v1580_v43, -inf }
 0xe07   :  { %1605 = vmax.xlane.f32.xlu1 %v1604_v35 }
 0xe08   :  { %v1598_v6 = vsel %vm564_vm5, %v1572_v39, -inf }
 0xe09   :  { %1596 = vmax.xlane.f32.xlu0 %v1595_v2 }
 0xe0b   :  { %1599 = vmax.xlane.f32.xlu1 %v1598_v6  ;;  %v2440_v6 = vld [vmem:[%s3788_s7 + $0x10] sm:$0xf] }
 0xe0d   :  { %1602 = vmax.xlane.f32.xlu0 %v1601_v54 }
 0xe1c   :  { %1679 = vrot.lane.b32.xlu1 %v3575_v24, %s3054_s20 }
 0xe23   :  { %1681 = vrot.lane.b32.xlu0 %v1481_v36, %s3054_s20 }
 0xe86   :  { %v1585_v59 = vpop.xlane.xlu1 %1584 }
 0xe87   :  { %v1607_v50 = vsub.f32 %v1553_v48, %v1585_v59 }
 0xe89   :  { %v1615_v11 = vmul.f32 1.442695, %v1607_v50 }
 0xe8a   :  { %v1588_v62 = vpop.xlane.xlu0 %1587  ;;  %v1594_v3 = vpop.xlane.xlu1 %1593 }
 0xe8b   :  { %v1608_v21 = vsub.f32 %v1556_v55, %v1588_v62  ;;  %v1610_v4 = vsub.f32 %v1564_v51, %v1594_v3  ;;  %v1777_v3 = vsel %vm757_vm6, %v2440_v6, 0 }
 0xe8d   :  { %v1621_v5 = vmul.f32 1.442695, %v1610_v4  ;;  %v1617_v7 = vmul.f32 1.442695, %v1608_v21 }
 0xe8e   :  { %v1591_v8 = vpop.xlane.xlu0 %1590 }
 0xe8f   :  { %v1609_v9 = vsub.f32 %v1561_v57, %v1591_v8  ;;  %2987 = vpow2.f32 %v1621_v5 }
 0xe90   :  { %v1606_v10 = vpop.xlane.xlu1 %1605  ;;  %2989 = vpow2.f32 %v1617_v7 }
 0xe91   :  { %v1619_v13 = vmul.f32 1.442695, %v1609_v9  ;;  %v1614_v14 = vsub.f32 %v1580_v43, %v1606_v10 }
 0xe92   :  { %v1597_v15 = vpop.xlane.xlu0 %1596 }
 0xe93   :  { %2991 = vpow2.f32 %v1619_v13  ;;  %v1629_v16 = vmul.f32 1.442695, %v1614_v14  ;;  %v1611_v18 = vsub.f32 %v1569_v63, %v1597_v15  ;;  %v2442_v14 = vld [vmem:[%s3788_s7 + $0x18] sm:$0xf] }
 0xe94   :  { %v1600_v17 = vpop.xlane.xlu1 %1599  ;;  %2993 = vpow2.f32 %v1615_v11  ;;  %v1871_v15 = vsel %vm757_vm6, %v2442_v14, 0 }
 0xe95   :  { %v1612_v19 = vsub.f32 %v1572_v39, %v1600_v17  ;;  %2995 = vpow2.f32 %v1629_v16  ;;  %v1623_v27 = vmul.f32 1.442695, %v1611_v18  ;;  %2840 = vmatpush3.bf16.msra.mxu1 %v1871_v15 }
 0xe96   :  { %v1603_v20 = vpop.xlane.xlu0 %1602  ;;  %2851 = vmatprep.subr.bf16.mxu1 %v3051_v42 }
 0xe97   :  { %v1625_v24 = vmul.f32 1.442695, %v1612_v19  ;;  %v1613_v29 = vsub.f32 %v1577_v22, %v1603_v20  ;;  %v2441_v19 = vld [vmem:[%s3788_s7 + $0x14] sm:$0xf] }
 0xe98   :  { %v1680_v36 = vpop.permute.xlu1 %1679 }
 0xe99   :  { %v1627_v31 = vmul.f32 1.442695, %v1613_v29  ;;  %2997 = vpow2.f32 %v1625_v24  ;;  %v1824_v29 = vsel %vm757_vm6, %v2441_v19, 0  ;;  %v2934_v19 = vld [vmem:[%s3794_s13 + $0x70] sm:$0xff]  }
 0xe9a   :  { %v1682_v33 = vpop.permute.xlu0 %1681 }
 0xe9b   :  { %2999 = vpow2.f32 %v1627_v31  ;;  %2811 = vmatprep.subr.bf16.mxu0 %v1682_v33 }
 0xe9c   :  { %2812 = vmatpush3.bf16.msra.mxu0 %v1682_v33  ;;  %v2988_v37 = vpop.eup %2987  ;;  %3001 = vpow2.f32 %v1623_v27 }
 0xe9d   :  { %2813 = vmatprep.subr.bf16.mxu0 %v1680_v36  ;;  %v1640_v23 = vsel %vm564_vm5, %v2988_v37, 0.0  ;;  %v2990_v28 = vpop.eup %2989 }
 0xe9e   :  { %1641 = vadd.xlane.f32.xlu1 %v1640_v23  ;;  %v1634_v41 = vsel %vm564_vm5, %v2990_v28, 0.0 }
 0xea0   :  { %v2992_v38 = vpop.eup %2991  ;;  %2814 = vmatpush3.bf16.msra.mxu0 %v1680_v36  ;;  %v2443_v36 = vld [vmem:[%s3788_s7 + $0x1c] sm:$0xf] }
 0xea1   :  { %v1637_v40 = vsel %vm564_vm5, %v2992_v38, 0.0  ;;  %v2994_v26 = vpop.eup %2993 }
 0xea2   :  { %1638 = vadd.xlane.f32.xlu0 %v1637_v40  ;;  %v3624_v44 = vpop.eup %2995  ;;  %1635 = vadd.xlane.f32.xlu1 %v1634_v41  ;;  %v1631_v45 = vsel %vm564_vm5, %v2994_v26, 0.0 }
 0xea3   :  { %v1652_v46 = vsel %vm564_vm5, %v3624_v44, 0.0 }
 0xea6   :  { %1632 = vadd.xlane.f32.xlu0 %v1631_v45  ;;  %v2998_v47 = vpop.eup %2997  ;;  %1653 = vadd.xlane.f32.xlu1 %v1652_v46 }
 0xea7   :  { %v1646_v52 = vsel %vm564_vm5, %v2998_v47, 0.0 }
 0xea8   :  { %v3000_v48 = vpop.eup %2999 }
 0xea9   :  { %v1649_v49 = vsel %vm564_vm5, %v3000_v48, 0.0  ;;  %v3002_v51 = vpop.eup %3001 }
 0xeaa   :  { %1650 = vadd.xlane.f32.xlu0 %v1649_v49  ;;  %1647 = vadd.xlane.f32.xlu1 %v1646_v52  ;;  %v1643_v53 = vsel %vm564_vm5, %v3002_v51, 0.0 }
 0xeae   :  { %1644 = vadd.xlane.f32.xlu0 %v1643_v53 }
 0xebb   :  { %1677 = vrot.lane.b32.xlu1 %v3579_v30, %s3054_s20 }
 0xec4   :  { %1675 = vrot.lane.b32.xlu0 %v3571_v12, %s3054_s20 }
 0xf27   :  { %v1642_v55 = vpop.xlane.xlu1 %1641 }
 0xf2b   :  { %v1639_v56 = vpop.xlane.xlu0 %1638  ;;  %v1636_v57 = vpop.xlane.xlu1 %1635 }
 0xf2c   :  { %3003 = vrcp.f32 %v1639_v56 }
 0xf2d   :  { %3005 = vrcp.f32 %v1636_v57 }
 0xf2e   :  { %3007 = vrcp.f32 %v1642_v55 }
 0xf2f   :  { %v1633_v58 = vpop.xlane.xlu0 %1632  ;;  %v1654_v60 = vpop.xlane.xlu1 %1653 }
 0xf30   :  { %3009 = vrcp.f32 %v1633_v58 }
 0xf33   :  { %v1651_v61 = vpop.xlane.xlu0 %1650  ;;  %v1648_v34 = vpop.xlane.xlu1 %1647 }
 0xf34   :  { %3011 = vrcp.f32 %v1651_v61 }
 0xf35   :  { %3013 = vrcp.f32 %v1648_v34 }
 0xf36   :  { %3015 = vrcp.f32 %v1654_v60 }
 0xf37   :  { %v1645_v63 = vpop.xlane.xlu0 %1644  ;;  %v1678_v30 = vpop.permute.xlu1 %1677 }
 0xf38   :  { %3017 = vrcp.f32 %v1645_v63  ;;  %2815 = vmatprep.subr.bf16.mxu0 %v1678_v30 }
 0xf39   :  { %v3004_v43 = vpop.eup %3003  ;;  %2816 = vmatpush3.bf16.msra.mxu0 %v1678_v30 }
 0xf3a   :  { %v3006_v12 = vpop.eup %3005  ;;  %v1665_v35 = vmul.f32 %v3004_v43, %v2992_v38  ;;  %v1918_v38 = vsel %vm757_vm6, %v2443_v36, 0 }
 0xf3b   :  { %v1676_v0 = vpop.permute.xlu0 %1675  ;;  %v3008_v1 = vpop.eup %3007  ;;  %v1664_v2 = vmul.f32 %v3006_v12, %v2990_v28 }
 0xf3c   :  { %2817 = vmatprep.subr.bf16.mxu0 %v1676_v0  ;;  %v1666_v54 = vmul.f32 %v3008_v1, %v2988_v37 }
 0xf3d   :  { %v3010_v39 = vpop.eup %3009  ;;  %2818 = vmatpush3.bf16.msra.mxu0 %v1676_v0 }
 0xf3e   :  { %v1663_v22 = vmul.f32 %v3010_v39, %v2994_v26  ;;  %2827 = vmatprep.subr.bf16.mxu0 %v3051_v42  ;;  %v1672_v62 = vpack.c.bf16 %v1666_v54, %v1665_v35  ;;  %v2449_v35 = vld [vmem:[%s3789_s8 + $0x1] ss:$0 sm:$0xff] }
 0xf40   :  { %v1671_v59 = vpack.c.bf16 %v1664_v2, %v1663_v22 }
 0xf41   :  { %v3012_v21 = vpop.eup %3011 }
 0xf42   :  { %2819 = vmatprep.mubr.msk.bf16.mxu0 %vm564_vm5, %v1671_v59  ;;  %v3014_v4 = vpop.eup %3013  ;;  %v1669_v7 = vmul.f32 %v3012_v21, %v3000_v48 }
 0xf43   :  { %2820 = vmatmul.mubr.msk.bf16.vlgmr.msra.gmra.mxu0 %vm564_vm5, %v1672_v62  ;;  %v3016_v50 = vpop.eup %3015  ;;  %v1668_v9 = vmul.f32 %v3014_v4, %v2998_v47 }
 0xf44   :  { %2828 = vmatpush3.bf16.msra.mxu0 %v1777_v3  ;;  %v1670_v10 = vmul.f32 %v3016_v50, %v3624_v44 }
 0xf45   :  { %v3018_v5 = vpop.eup %3017  ;;  %2833 = vmatprep.subr.bf16.mxu0 %v3051_v42 }
 0xf46   :  { %v1667_v8 = vmul.f32 %v3018_v5, %v3002_v51  ;;  %v1674_v13 = vpack.c.bf16 %v1670_v10, %v1669_v7 }
 0xf48   :  { %v1673_v11 = vpack.c.bf16 %v1668_v9, %v1667_v8 }
 0xf4a   :  { %2823 = vmatprep.mubr.msk.bf16.mxu0 %vm564_vm5, %v1673_v11 }
 0xf4b   :  { %2824 = vmatmul.mubr.msk.bf16.gmra.mxu0 %vm564_vm5, %v1674_v13 }
 0xf4c   :  { %2829 = vmatprep.mubr.msk.bf16.mxu0 %vm3052_vm3, %v3051_v42 }
0x1003   :  { %v2821_v16 = vpop.f32.mrf.mxu0 }
0x1005   :  { %v1733_v17 = vpop.f32.mrf.mxu0 }
0x1007   :  { %v2822_v18 = vpop.f32.mrf.mxu0 }
0x1008   :  { %v1765_v23 = vpack.c.bf16 %v2822_v18, %v2821_v16  ;;  %v2931_v16 = vld [vmem:[%s3792_s11 + $0x18] sm:$0xff]  }
0x1009   :  { %v1736_v20 = vpop.f32.mrf.mxu0  ;;  %v2933_v18 = vld [vmem:[%s3794_s13 + $0x78] sm:$0xff]  }
0x100a   :  { %v1764_v24 = vpack.c.bf16 %v1736_v20, %v1733_v17  ;;  %v2932_v17 = vld [vmem:[%s3792_s11 + $0x10] sm:$0xff]   ;;  %v2935_v20 = vld [vmem:[%s3794_s13 + $0x68] sm:$0xff]  }
0x100b   :  { %v2825_v27 = vpop.f32.mrf.mxu0 }
0x100c   :  { %2830 = vmatmul.mubr.msk.bf16.vlgmr.msra.gmra.mxu0 %vm474_vm4, %v1764_v24  ;;  %v2936_v24 = vld [vmem:[%s3794_s13 + $0x60] sm:$0xff]  }
0x100d   :  { %2834 = vmatpush3.bf16.msra.mxu0 %v1824_v29  ;;  %v1749_v31 = vpop.f32.mrf.mxu0  ;;  %2835 = vmatprep.mubr.msk.bf16.mxu0 %vm3052_vm3, %v3051_v42  ;;  %v2937_v29 = vld [vmem:[%s3794_s13 + $0x58] sm:$0xff]  }
0x100e   :  { %2845 = vmatprep.subr.bf16.mxu0 %v3051_v42 }
0x100f   :  { %v2826_v33 = vpop.f32.mrf.mxu0 }
0x1010   :  { %v1767_v40 = vpack.c.bf16 %v2826_v33, %v2825_v27 }
0x1011   :  { %v1752_v37 = vpop.f32.mrf.mxu0 }
0x1012   :  { %v1766_v28 = vpack.c.bf16 %v1752_v37, %v1749_v31 }
0x1014   :  { %2836 = vmatmul.mubr.msk.bf16.vlgmr.msra.gmra.mxu0 %vm474_vm4, %v1765_v23  ;;  %2842 = vmatmul.mubr.msk.bf16.vlgmr.msra.gmra.mxu1 %vm474_vm4, %v1766_v28 }
0x1015   :  { %2846 = vmatpush3.bf16.msra.mxu0 %v1918_v38  ;;  %2847 = vmatprep.mubr.msk.bf16.mxu0 %vm3052_vm3, %v3051_v42 }
0x1016   :  { %2855 = vmatprep.mubr.msk.bf16.mxu1 %vm3052_vm3, %v3051_v42  ;;  %2859 = vmatprep.subr.bf16.mxu0 %v3051_v42 }
0x1017   :  { %2852 = vmatpush3.bf16.msra.mxu1 %v2931_v16 }
0x1018   :  { %2853 = vmatprep.subr.bf16.mxu1 %v3051_v42 }
0x101b   :  { %2854 = vmatpush3.bf16.msra.mxu1 %v2932_v17 }
0x101c   :  { %2848 = vmatmul.mubr.msk.bf16.vlgmr.msra.gmra.mxu0 %vm474_vm4, %v1767_v40  ;;  %2879 = vmatprep.subr.bf16.mxu1 %v3051_v42  ;;  %v2452_v40 = vld [vmem:[%s3790_s9 + $0x1] ss:$0 sm:$0xff] }
0x101d   :  { %2875 = vmatprep.mubr.msk.bf16.mxu0 %vm3052_vm3, %v3051_v42  ;;  %2860 = vmatpush3.bf16.msra.mxu0 %v2933_v18 }
0x101e   :  { %2861 = vmatprep.subr.bf16.mxu0 %v3051_v42 }
0x1021   :  { %2862 = vmatpush3.bf16.msra.mxu0 %v2934_v19 }
0x1022   :  { %2863 = vmatprep.subr.bf16.mxu0 %v3051_v42 }
0x1025   :  { %2864 = vmatpush3.bf16.msra.mxu0 %v2935_v20 }
0x1026   :  { %2865 = vmatprep.subr.bf16.mxu0 %v3051_v42 }
0x1029   :  { %2866 = vmatpush3.bf16.msra.mxu0 %v2936_v24  ;;  %v2489_v24 = vld [vmem:[%s3796_s15] ss:$0 sm:$0xff]  ;;  %s3055_s15 = smov [#allocation2]  }
0x102a   :  { %2867 = vmatprep.subr.bf16.mxu0 %v3051_v42  ;;  %s2343_s6 = sshll.u32 %s3055_s15, 4  ;;  %s2344_s6 = int_to_ptr.vmem [resolvable:$true] %s2343_s6 }
0x102b   :  { %p3032_p1 = scmp.lt.s32.totalorder %s2344_s6, %s2344_s6 }
0x102d   :  { %2868 = vmatpush3.bf16.msra.mxu0 %v2937_v29 }
0x102e   :  { %2869 = vmatprep.subr.bf16.mxu0 %v3051_v42 }
0x10cc   :  { %v1813_v26 = vpop.f32.mrf.mxu0 }
0x10cd   :  { %v1961_v52 = vsel %vm182_vm2, %v1813_v26, 0.0 }
0x10ce   :  { %v2831_v41 = vpop.f32.mrf.mxu0 }
0x10d0   :  { %v1816_v44 = vpop.f32.mrf.mxu0 }
0x10d1   :  { %v1968_v61 = vsel %vm182_vm2, %v1816_v44, 0.0 }
0x10d2   :  { %v2832_v45 = vpop.f32.mrf.mxu0 }
0x10d3   :  { %v2453_v45 = vld [vmem:[%s3791_s10 + $0x1] ss:$0 sm:$0xff] }
0x10d4   :  { %v1860_v46 = vpop.f32.mrf.mxu0  ;;  %v1907_v47 = vpop.f32.mrf.mxu1 }
0x10d5   :  { %v1962_v48 = vsel %vm182_vm2, %v1860_v46, 0.0  ;;  %v1964_v34 = vsel %vm182_vm2, %v1907_v47, 0.0 }
0x10d6   :  { %v2837_v49 = vpop.f32.mrf.mxu0  ;;  %v2843_v51 = vpop.f32.mrf.mxu1  ;;  %v1963_v53 = vadd.f32 %v1962_v48, %v1961_v52  ;;  %v2939_v52 = vld [vmem:[%s3794_s13 + $0x48] sm:$0xff]  }
0x10d7   :  { %v2938_v51 = vld [vmem:[%s3794_s13 + $0x50] sm:$0xff]  }
0x10d8   :  { %v1863_v55 = vpop.f32.mrf.mxu0  ;;  %v1910_v56 = vpop.f32.mrf.mxu1  ;;  %v1965_v63 = vadd.f32 %v1964_v34, %v1963_v53  ;;  %2870 = vmatpush3.bf16.msra.mxu0 %v2938_v51  ;;  %v2940_v53 = vld [vmem:[%s3794_s13 + $0x40] sm:$0xff]  }
0x10d9   :  { %v1969_v57 = vsel %vm182_vm2, %v1863_v55, 0.0  ;;  %v1971_v39 = vsel %vm182_vm2, %v1910_v56, 0.0  ;;  %2871 = vmatprep.subr.bf16.mxu0 %v3051_v42  ;;  %v2459_v55 = vld [vmem:[%s3793_s12 + $0x1] ss:$0 sm:$0xff] }
0x10da   :  { %v2838_v58 = vpop.f32.mrf.mxu0  ;;  %v2844_v60 = vpop.f32.mrf.mxu1  ;;  %v1970_v30 = vadd.f32 %v1969_v57, %v1968_v61 }
0x10dc   :  { %v1954_v43 = vpop.f32.mrf.mxu0  ;;  %v1972_v22 = vadd.f32 %v1971_v39, %v1970_v30  ;;  %2872 = vmatpush3.bf16.msra.mxu0 %v2939_v52 }
0x10dd   :  { %v1966_v12 = vsel %vm182_vm2, %v1954_v43, 0.0  ;;  %2873 = vmatprep.subr.bf16.mxu0 %v3051_v42 }
0x10de   :  { %v1967_v0 = vadd.f32 %v1966_v12, %v1965_v63  ;;  %v2849_v1 = vpop.f32.mrf.mxu0 }
0x10e0   :  { %v1975_v2 = vadd.f32 %v1967_v0, %v3511_v25  ;;  %v1957_v6 = vpop.f32.mrf.mxu0  ;;  %2874 = vmatpush3.bf16.msra.mxu0 %v2940_v53  ;;  %v2488_v0 = vld [vmem:[%s3814_s26 + $0x1] ss:$0 sm:$0xff] }
0x10e1   :  { %v1973_v54 = vsel %vm182_vm2, %v1957_v6, 0.0 }
0x10e2   :  { %v1974_v59 = vadd.f32 %v1973_v54, %v1972_v22  ;;  %v2850_v62 = vpop.f32.mrf.mxu0  ;;  %v3688_v3 = vadd.f32 %v2449_v35, %v1975_v2 }
0x10e4   :  { %v1976_v21 = vadd.f32 %v1974_v59, %v3516_v32  ;;  %v1991_v4 = vsel %vm182_vm2, %v3688_v3, 0.0 }
0x10e5   :  { %1992 = vadd.xlane.f32.xlu1 %v1991_v4 }
0x10e6   :  { %v3693_v50 = vadd.f32 %v2449_v35, %v1976_v21 }
0x10e8   :  { %v1994_v5 = vsel %vm182_vm2, %v3693_v50, 0.0 }
0x10e9   :  { %1995 = vadd.xlane.f32.xlu0 %v1994_v5 }
0x116e   :  { %v1993_v25 = vpop.xlane.xlu1 %1992 }
0x116f   :  { %v1997_v7 = vmul.f32 0.03125, %v1993_v25 }
0x1171   :  { %v1999_v8 = vsub.f32 %v3688_v3, %v1997_v7 }
0x1172   :  { %v1996_v9 = vpop.xlane.xlu0 %1995 }
0x1173   :  { %v1998_v10 = vmul.f32 0.03125, %v1996_v9  ;;  %v2001_v11 = vmul.f32 %v1999_v8, %v1999_v8 }
0x1175   :  { %v2000_v13 = vsub.f32 %v3693_v50, %v1998_v10  ;;  %v2003_v32 = vsel %vm182_vm2, %v2001_v11, 0.0  ;;  %v2941_v11 = vld [vmem:[%s3798_s17 + $0x8] sm:$0xff]  }
0x1176   :  { %2004 = vadd.xlane.f32.xlu0 %v2003_v32 }
0x1177   :  { %v2002_v14 = vmul.f32 %v2000_v13, %v2000_v13 }
0x1179   :  { %v2006_v15 = vsel %vm182_vm2, %v2002_v14, 0.0 }
0x117a   :  { %2007 = vadd.xlane.f32.xlu1 %v2006_v15 }
0x11ff   :  { %v2005_v27 = vpop.xlane.xlu0 %2004 }
0x1200   :  { %v2009_v31 = vmul.f32 0.03125, %v2005_v27 }
0x1202   :  { %v2011_v33 = vadd.f32 1e-05, %v2009_v31 }
0x1203   :  { %v2008_v36 = vpop.xlane.xlu1 %2007 }
0x1204   :  { %3019 = vrsqrt.f32 %v2011_v33  ;;  %v2010_v37 = vmul.f32 0.03125, %v2008_v36 }
0x1206   :  { %v2012_v23 = vadd.f32 1e-05, %v2010_v37 }
0x1208   :  { %3021 = vrsqrt.f32 %v2012_v23 }
0x1211   :  { %v3020_v28 = vpop.eup %3019 }
0x1212   :  { %v2015_v38 = vmul.f32 %v3020_v28, %v1999_v8  ;;  %v2491_v28 = vld [vmem:[%s3799_s18] ss:$0 sm:$0xff] }
0x1214   :  { %v2023_v44 = vmul.f32 %v2452_v40, %v2015_v38 }
0x1215   :  { %v3022_v26 = vpop.eup %3021 }
0x1216   :  { %v2016_v41 = vmul.f32 %v3022_v26, %v2000_v13  ;;  %v2031_v47 = vadd.f32 %v2453_v45, %v2023_v44  ;;  %v2942_v13 = vld [vmem:[%s3798_s17] sm:$0xff]  }
0x1218   :  { %v2024_v46 = vmul.f32 %v2452_v40, %v2016_v41 }
0x121a   :  { %v2032_v48 = vadd.f32 %v2453_v45, %v2024_v46 }
0x121c   :  { %v2033_v49 = vpack.c.bf16 %v2032_v48, %v2031_v47 }
0x121e   :  { %2856 = vmatmul.mubr.msk.bf16.vlgmr.msra.gmra.mxu1 %vm182_vm2, %v2033_v49 }
0x121f   :  { %2883 = vmatprep.mubr.msk.bf16.mxu1 %vm3052_vm3, %v3051_v42  ;;  %2880 = vmatpush3.bf16.msra.mxu1 %v2941_v11 }
0x1220   :  { %2881 = vmatprep.subr.bf16.mxu1 %v3051_v42  ;;  %v2490_v42 = vld [vmem:[%s3797_s16] ss:$0 sm:$0xff]  ;;  %s3027_s16 = scalar_lea.vmem %s2344_s6, 256 }
0x1221   :  { %p3028_p0 = scmp.ne.s32.totalorder %s2344_s6, %s3027_s16  ;;  %p3033_p2 = scmp.lt.s32.totalorder %s3027_s16, %s3027_s16 }
0x1223   :  { %2882 = vmatpush3.bf16.msra.mxu1 %v2942_v13  ;;  %p3034_p3 = por %p3033_p2, %p3032_p1 }
0x1225   :  { %p3035_p4 = pnand %p3034_p3, %p3028_p0 }
0x12de   :  { %v2096_v56 = vpop.f32.mrf.mxu1 }
0x12df   :  { %v2097_v58 = vadd.f32 %v2459_v55, %v2096_v56 }
0x12e0   :  { %v2857_v57 = vpop.f32.mrf.mxu1 }
0x12e1   :  { %v2103_v63 = vmax.f32 %v2097_v58, 0.0 }
0x12e2   :  { %v2099_v60 = vpop.f32.mrf.mxu1 }
0x12e3   :  { %v2100_v61 = vadd.f32 %v2459_v55, %v2099_v60 }
0x12e4   :  { %v2858_v34 = vpop.f32.mrf.mxu1 }
0x12e5   :  { %v2104_v30 = vmax.f32 %v2100_v61, 0.0 }
0x12e7   :  { %v2105_v43 = vpack.c.bf16 %v2104_v30, %v2103_v63 }
0x12e9   :  { %2876 = vmatmul.mubr.bf16.vlgmr.msra.gmra.mxu0 %v2105_v43 }
0x13a9   :  { %v2205_v12 = vpop.f32.mrf.mxu0 }
0x13aa   :  { %v2212_v1 = vadd.f32 %v2205_v12, %v3688_v3 }
0x13ab   :  { %v2877_v39 = vpop.f32.mrf.mxu0 }
0x13ac   :  { %v2222_v35 = vadd.f32 %v2488_v0, %v2212_v1 }
0x13ad   :  { %v2208_v22 = vpop.f32.mrf.mxu0 }
0x13ae   :  { %v2213_v2 = vadd.f32 %v2208_v22, %v3693_v50  ;;  %v2226_v6 = vsel %vm182_vm2, %v2222_v35, 0.0 }
0x13af   :  { %2227 = vadd.xlane.f32.xlu0 %v2226_v6  ;;  %v2878_v54 = vpop.f32.mrf.mxu0 }
0x13b0   :  { %v2223_v59 = vadd.f32 %v2488_v0, %v2213_v2 }
0x13b2   :  { %v2229_v62 = vsel %vm182_vm2, %v2223_v59, 0.0 }
0x13b3   :  { %2230 = vadd.xlane.f32.xlu1 %v2229_v62 }
0x1438   :  { %v2228_v21 = vpop.xlane.xlu0 %2227 }
0x1439   :  { %v2232_v4 = vmul.f32 0.03125, %v2228_v21 }
0x143b   :  { %v2234_v5 = vsub.f32 %v2222_v35, %v2232_v4 }
0x143c   :  { %v2231_v25 = vpop.xlane.xlu1 %2230 }
0x143d   :  { %v2233_v7 = vmul.f32 0.03125, %v2231_v25  ;;  %v2236_v8 = vmul.f32 %v2234_v5, %v2234_v5 }
0x143f   :  { %v2235_v3 = vsub.f32 %v2223_v59, %v2233_v7  ;;  %v2238_v9 = vsel %vm182_vm2, %v2236_v8, 0.0 }
0x1440   :  { %2239 = vadd.xlane.f32.xlu0 %v2238_v9 }
0x1441   :  { %v2237_v10 = vmul.f32 %v2235_v3, %v2235_v3 }
0x1443   :  { %v2241_v50 = vsel %vm182_vm2, %v2237_v10, 0.0 }
0x1444   :  { %2242 = vadd.xlane.f32.xlu1 %v2241_v50 }
0x14c9   :  { %v2240_v32 = vpop.xlane.xlu0 %2239 }
0x14ca   :  { %v2244_v14 = vmul.f32 0.03125, %v2240_v32 }
0x14cc   :  { %v2246_v15 = vadd.f32 1e-05, %v2244_v14 }
0x14cd   :  { %v2243_v16 = vpop.xlane.xlu1 %2242 }
0x14ce   :  { %3023 = vrsqrt.f32 %v2246_v15  ;;  %v2245_v17 = vmul.f32 0.03125, %v2243_v16 }
0x14d0   :  { %v2247_v18 = vadd.f32 1e-05, %v2245_v17 }
0x14d2   :  { %3025 = vrsqrt.f32 %v2247_v18 }
0x14db   :  { %v3024_v19 = vpop.eup %3023 }
0x14dc   :  { %v2250_v20 = vmul.f32 %v3024_v19, %v2234_v5 }
0x14de   :  { %v2258_v31 = vmul.f32 %v2489_v24, %v2250_v20 }
0x14df   :  { %v3026_v29 = vpop.eup %3025 }
0x14e0   :  { %v2251_v27 = vmul.f32 %v3026_v29, %v2235_v3  ;;  %v2266_v36 = vadd.f32 %v2490_v42, %v2258_v31 }
0x14e2   :  { %v2259_v33 = vmul.f32 %v2489_v24, %v2251_v27 }
0x14e4   :  { %v2267_v37 = vadd.f32 %v2490_v42, %v2259_v33 }
0x14e6   :  { %v2268_v23 = vpack.c.bf16 %v2267_v37, %v2266_v36 }
0x14e8   :  { %2884 = vmatmul.mubr.msk.bf16.vlgmr.msra.gmra.mxu1 %vm182_vm2, %v2268_v23 }
0x15a8   :  { %v2329_v38 = vpop.f32.mrf.mxu1 }
0x15a9   :  { %v2330_v40 = vadd.f32 %v2491_v28, %v2329_v38 }
0x15aa   :  { %v2885_v26 = vpop.f32.mrf.mxu1 }
0x15ab   :  { %2336 = vst [vmem:[#allocation2] sm:$0xff] %v2330_v40 }
0x15ac   :  { %v2332_v41 = vpop.f32.mrf.mxu1 }
0x15ad   :  { %v2333_v44 = vadd.f32 %v2491_v28, %v2332_v41 }
0x15ae   :  { %v2886_v45 = vpop.f32.mrf.mxu1 }
0x15af   :  { %2337 = vst [vmem:[#allocation2 + $0x8] sm:$0xff] %v2333_v44 }
0x15b0   :  { %3038 = shalt.err (!%p3035_p4)
}
0x15b1   :  { %s3056_s28 = smov 128   ;;  %s3057_s18 = smov 8  }
0x15b2   :  { %2349 = dma.vmem_to_hbm [thread:$0]  %s2344_s6, 256, %s3800_s19, [#allocation3], %s3056_s28, %s3056_s28, %s3057_s18  }
0x15b3   :  { %3047 = dma.done.wait [#allocation3], 256  }
0x15b4   :  { %3048 = vsyncadd [#allocation3], 4294967040 }
0x15b5   :  { %2353 = vsyncpa [#allocation3], 1 }

</bundles_post_ra>
